<compile_context>
chip_gen: v7x
topology: tpu7x:2x2x1
jax: 0.10.0
libtpu: 0.0.40
codegen_flags: <defaults>
</compile_context>

<pallas_src>
import functools
import numpy as np
import jax
import jax.numpy as jnp
from jax.experimental import pallas as pl
from jax.experimental.pallas import tpu as pltpu

# ------------------------------- config ------------------------------------
NUM_IN      = 3                      # coordinate dim
NUM_OUT     = 1                      # nef output channels
HIDDEN      = 32                     # nef_linear_out_dims (in_features of hidden linears)
NUM_HIDDEN  = 2                      # Linear modules inside nef.hidden_layers
NUM_LAYERS  = NUM_HIDDEN + 1         # + final_linear == len(nef_linear_layers)
COND_HIDDEN = 64                     # conditioning MLP hidden width
CODE_DIM    = 16                     # per-signal latent code dim
NUM_SIGNALS = 4
N_POINTS    = 256

WARMUP_STEPS = 4                     # cfg.warmup_steps (config -> compile-time)
STEP         = 2                     # self.step        (state  -> runtime scalar)
DO_FILM      = True                  # cfg.do

# ---- packed-buffer lane layout (segment starts are 128-lane-tile aligned) ----
LANE      = 128
W_IN_W    = LANE + HIDDEN                   # w_in:  wcx @ [0:64), we @ [128:160)
MOD_W     = NUM_LAYERS * LANE               # 384: layer l tile @ [l*128,(l+1)*128);
                                            #      gamma_l at [0,H), beta_l at [H,2H) in-tile
B_MOD_OFF = 2 * LANE                        # 256
BH_OFF    = B_MOD_OFF + MOD_W               # 640: hidden bias, layer l @ [BH_OFF+l*128, +H)
WF_OFF    = BH_OFF + NUM_HIDDEN * LANE      # 896: final weight row (H,)
BF_OFF    = WF_OFF + LANE                   # 1024: final bias (1,)
B_ALL_W   = BF_OFF + LANE                   # 1152
W_HID_W   = NUM_HIDDEN * LANE               # 256: hidden weights, layer l @ [l*128, +H)


# ------------------------------- kernel ------------------------------------
def _modulator_kernel(coords_ref, win_ref, wmod_ref, whid_ref, ball_ref, out_ref,
                      *, H, L, do_film):
    f32 = jnp.float32
    coords = coords_ref[...]                                        # (tile_n, NUM_IN)

    # Fused input matmul: conditioning-MLP hidden (lanes [0,64)) and nef embedding
    # (lanes [128,160)) share one coords@W contraction; code@wcz + bc1 is folded
    # into the bias row by the wrapper, so this is a single MXU pass.
    h0 = jnp.dot(coords, win_ref[...], preferred_element_type=f32)
    h0 = jnp.maximum(h0 + ball_ref[:, 0:W_IN_W], 0.0)
    ch = h0[:, 0:COND_HIDDEN]                                       # cond hidden
    x  = h0[:, LANE:LANE + H]                                       # embedding (not hooked)

    # ---- neural field forward with FiLM pre-hooks on every (hidden + final) Linear.
    # gamma/beta are computed lazily per layer against a 128-lane weight tile: low
    # vreg pressure, no big (tile_n, 2*H*L) intermediate. Warmup decay is already
    # folded into wmod / the mod bias by the wrapper.
    for l in range(L):
        if do_film:
            gb = (jnp.dot(ch, wmod_ref[:, l * LANE:(l + 1) * LANE],
                          preferred_element_type=f32)
                  + ball_ref[:, B_MOD_OFF + l * LANE:B_MOD_OFF + (l + 1) * LANE])
            g = gb[:, 0:H]
            b = gb[:, H:2 * H]
            x = g * x + b
        if l < L - 1:
            wl = whid_ref[:, l * LANE: l * LANE + H]
            bl = ball_ref[:, BH_OFF + l * LANE: BH_OFF + l * LANE + H]
            x = jnp.maximum(jnp.dot(x, wl, preferred_element_type=f32) + bl, 0.0)
        else:
            # final_linear computed transposed so the store is lane-dense (1, tile_n).
            wf_row = ball_ref[:, WF_OFF:WF_OFF + H]                  # (1, H)
            bf     = ball_ref[:, BF_OFF:BF_OFF + 1]                  # (1, 1)
            out_ref[...] = jnp.dot(wf_row, x.T, preferred_element_type=f32) + bf


# --------------------------- one-time parameter packing ---------------------
def pack_modulator_params(params):
    """Builds the packed, lane-aligned weight/bias buffers. Call once per parameter
    update; the result is reused by every forward call (keeps the ~20 .at[].set ops
    out of the per-call hot path)."""
    f32 = jnp.float32
    H, L = HIDDEN, NUM_LAYERS
    HL = H * L

    wc1 = params["wc1"]
    wcx = wc1[:NUM_IN]                                               # (NUM_IN, COND_HIDDEN)
    # per-patient conditioning bias with the constant code path folded in: bc1 + code@wcz
    bin_cond_all = params["bc1"][None, :] + params["codes"] @ wc1[NUM_IN:]   # (S, COND_HIDDEN)

    # packed input weight: wcx in tile 0, we in tile 1 (lane-aligned segments)
    w_in = jnp.zeros((NUM_IN, W_IN_W), f32)
    w_in = w_in.at[:, 0:COND_HIDDEN].set(wcx)
    w_in = w_in.at[:, LANE:LANE + H].set(params["we"])

    # per-layer modulation weight/bias tiles:
    #   gamma[..., l] column h == wc2 column (h*L + l); beta adds HL offset.
    #   layer l owns lane tile [l*128,(l+1)*128): gamma at [0,H), beta at [H,2H) in-tile.
    wc2, bc2 = params["wc2"], params["bc2"]
    w_mod = jnp.zeros((COND_HIDDEN, MOD_W), f32)
    b_mod = jnp.zeros((MOD_W,), f32)
    for l in range(L):
        g_cols = np.arange(H) * L + l
        b_cols = HL + g_cols
        base = l * LANE
        w_mod = w_mod.at[:, base:base + H].set(wc2[:, g_cols])
        w_mod = w_mod.at[:, base + H:base + 2 * H].set(wc2[:, b_cols])
        b_mod = b_mod.at[base:base + H].set(bc2[g_cols])
        b_mod = b_mod.at[base + H:base + 2 * H].set(bc2[b_cols])

    # packed hidden weights: layer l in lanes [l*128, l*128+H)
    w_hid = jnp.zeros((H, W_HID_W), f32)
    for l in range(NUM_HIDDEN):
        w_hid = w_hid.at[:, l * LANE:l * LANE + H].set(params["wh"][l])

    # per-patient packed bias/row buffer (all segments tile-aligned)
    b_all = jnp.zeros((NUM_SIGNALS, 1, B_ALL_W), f32)
    b_all = b_all.at[:, 0, 0:COND_HIDDEN].set(bin_cond_all)
    b_all = b_all.at[:, 0, LANE:LANE + H].set(
        jnp.broadcast_to(params["be"], (NUM_SIGNALS, H)))
    b_all = b_all.at[:, 0, B_MOD_OFF:B_MOD_OFF + MOD_W].set(
        jnp.broadcast_to(b_mod, (NUM_SIGNALS, MOD_W)))
    for l in range(NUM_HIDDEN):
        b_all = b_all.at[:, 0, BH_OFF + l * LANE:BH_OFF + l * LANE + H].set(
            jnp.broadcast_to(params["bh"][l], (NUM_SIGNALS, H)))
    b_all = b_all.at[:, 0, WF_OFF:WF_OFF + H].set(
        jnp.broadcast_to(params["wf"][:, 0], (NUM_SIGNALS, H)))
    b_all = b_all.at[:, 0, BF_OFF:BF_OFF + NUM_OUT].set(
        jnp.broadcast_to(params["bf"], (NUM_SIGNALS, NUM_OUT)))

    # masks for folding the runtime warmup decay into the packed mod weights/bias
    mod_mask = np.zeros((1, B_ALL_W), np.float32)     # all used modulation-bias lanes
    gamma_mask = np.zeros((1, B_ALL_W), np.float32)   # gamma bias lanes only
    for l in range(L):
        base = B_MOD_OFF + l * LANE
        mod_mask[0, base:base + 2 * H] = 1.0
        gamma_mask[0, base:base + H] = 1.0

    return {
        "w_in": w_in, "w_mod": w_mod, "w_hid": w_hid, "b_all": b_all,
        "mod_mask": jnp.asarray(mod_mask), "gamma_mask": jnp.asarray(gamma_mask),
    }


# ------------------------------- forward ------------------------------------
@functools.partial(jax.jit, static_argnames=("num_tiles",))
def modulator_forward_pallas(coords, patient_idx, packed, step, *, num_tiles=1):
    """num_tiles=1 is best on 1-TC chips (v5e/v6e); use num_tiles=2 on v7x so the
    'parallel' grid axis maps the two point-halves onto the two TensorCores."""
    f32 = jnp.float32
    N = coords.shape[0]
    H, L = HIDDEN, NUM_LAYERS
    assert N % num_tiles == 0
    tile_n = N // num_tiles
    assert tile_n % 8 == 0
    assert num_tiles == 1 or tile_n % LANE == 0

    # Runtime warmup-decay scalars, folded into the (tiny) packed mod weight/bias:
    #   gamma_t = (1-w) + w*gamma  ->  W_g *= w, b_g = w*b_g + (1-w)
    #   beta_t  = w*beta           ->  W_b *= w, b_b *= w
    # No retrace per step; no SMEM operand; no per-point scale work in the kernel.
    step_f = jnp.asarray(step, f32)
    if WARMUP_STEPS > 0:
        w = step_f / WARMUP_STEPS
        in_warm = (step_f <= WARMUP_STEPS).astype(f32)
        g_scale = in_warm * w + (1.0 - in_warm)
        g_bias = in_warm * (1.0 - w)
    else:
        g_scale = jnp.asarray(1.0, f32)
        g_bias = jnp.asarray(0.0, f32)

    w_mod = g_scale * packed["w_mod"]                                 # (64, MOD_W), tiny
    b_all = (packed["b_all"][patient_idx[0]]                          # (1, B_ALL_W)
             * (1.0 + (g_scale - 1.0) * packed["mod_mask"])
             + g_bias * packed["gamma_mask"])

    kernel = functools.partial(_modulator_kernel, H=H, L=L, do_film=DO_FILM)

    out_1n = pl.pallas_call(
        kernel,
        out_shape=jax.ShapeDtypeStruct((NUM_OUT, N), f32),
        grid=(num_tiles,),
        in_specs=[
            pl.BlockSpec((tile_n, NUM_IN), lambda i: (i, 0)),         # coords (tiled)
            pl.BlockSpec((NUM_IN, W_IN_W), lambda i: (0, 0)),         # w_in
            pl.BlockSpec((COND_HIDDEN, MOD_W), lambda i: (0, 0)),     # w_mod
            pl.BlockSpec((H, W_HID_W), lambda i: (0, 0)),             # w_hid
            pl.BlockSpec((1, B_ALL_W), lambda i: (0, 0)),             # b_all
        ],
        out_specs=pl.BlockSpec((NUM_OUT, tile_n), lambda i: (0, i)),  # lane-dense output
        compiler_params=pltpu.CompilerParams(dimension_semantics=("parallel",)),
    )(coords, packed["w_in"], w_mod, packed["w_hid"], b_all)

    return out_1n.T                                                   # (N, NUM_OUT)


# ----------------------------- pure-JAX reference ---------------------------
def reference_forward(coords, patient_idx, params):
    H, L = HIDDEN, NUM_LAYERS
    code = params["codes"][patient_idx[0]]
    z = jnp.concatenate(
        [coords, jnp.broadcast_to(code[None, :], (coords.shape[0], CODE_DIM))], axis=-1)
    h = jax.nn.relu(z @ params["wc1"] + params["bc1"])
    mods = h @ params["wc2"] + params["bc2"]
    gamma, beta = jnp.split(mods, 2, axis=-1)
    gamma = gamma.reshape(coords.shape[0], H, L)
    beta = beta.reshape(coords.shape[0], H, L)
    if WARMUP_STEPS > 0 and STEP <= WARMUP_STEPS:
        w = STEP / WARMUP_STEPS
        gamma = (1.0 - w) + gamma * w
        beta = beta * w
    x = jax.nn.relu(coords @ params["we"] + params["be"])
    for l in range(L):
        if DO_FILM:
            x = gamma[..., l] * x + beta[..., l]
        if l < L - 1:
            x = jax.nn.relu(x @ params["wh"][l] + params["bh"][l])
        else:
            x = x @ params["wf"] + params["bf"]
    return x


# ------------------------------- params ------------------------------------
def init_params(key):
    ks = jax.random.split(key, 10)
    s = 0.2
    p = {}
    p["codes"] = s * jax.random.normal(ks[0], (NUM_SIGNALS, CODE_DIM), jnp.float32)
    p["wc1"] = s * jax.random.normal(ks[1], (NUM_IN + CODE_DIM, COND_HIDDEN), jnp.float32)
    p["bc1"] = s * jax.random.normal(ks[2], (COND_HIDDEN,), jnp.float32)
    p["wc2"] = s * jax.random.normal(ks[3], (COND_HIDDEN, 2 * HIDDEN * NUM_LAYERS), jnp.float32)
    p["bc2"] = s * jax.random.normal(ks[4], (2 * HIDDEN * NUM_LAYERS,), jnp.float32)
    p["we"]  = s * jax.random.normal(ks[5], (NUM_IN, HIDDEN), jnp.float32)
    p["be"]  = s * jax.random.normal(ks[6], (HIDDEN,), jnp.float32)
    p["wh"]  = s * jax.random.normal(ks[7], (NUM_HIDDEN, HIDDEN, HIDDEN), jnp.float32)
    p["bh"]  = s * jax.random.normal(ks[8], (NUM_HIDDEN, HIDDEN), jnp.float32)
    p["wf"]  = s * jax.random.normal(ks[9], (HIDDEN, NUM_OUT), jnp.float32)
    p["bf"]  = jnp.zeros((NUM_OUT,), jnp.float32)
    return p


if __name__ == "__main__":
    key = jax.random.PRNGKey(0)
    kp, kc = jax.random.split(key, 2)
    params = init_params(kp)
    coords = jax.random.uniform(kc, (N_POINTS, NUM_IN), jnp.float32, -1.0, 1.0)
    patient_idx = jnp.array([2, 2], dtype=jnp.int32)     # only patient_idx[0] is used

    packed = pack_modulator_params(params)               # once per parameter update
    step = jnp.asarray(STEP, jnp.float32)                # runtime scalar (no retrace)

    out = modulator_forward_pallas(coords, patient_idx, packed, step, num_tiles=1)
    out = jax.block_until_ready(out)

    ref = reference_forward(coords, patient_idx, params)
    assert out.shape == (N_POINTS, NUM_OUT)
    np.testing.assert_allclose(np.asarray(out), np.asarray(ref), rtol=1e-4, atol=1e-4)
    print("KERNEL_OK")
</pallas_src>

<mosaic_0001>
module attributes {stable_mosaic.version = 11 : i64} {
  func.func @_modulator_kernel(%arg0: i32, %arg1: memref<256x3xf32, #tpu.memory_space<vmem>>, %arg2: memref<3x160xf32, #tpu.memory_space<vmem>>, %arg3: memref<64x384xf32, #tpu.memory_space<vmem>>, %arg4: memref<32x256xf32, #tpu.memory_space<vmem>>, %arg5: memref<1x1152xf32, #tpu.memory_space<vmem>>, %arg6: memref<1x256xf32, #tpu.memory_space<vmem>>) attributes {dimension_semantics = [#tpu.dimension_semantics<parallel>], iteration_bounds = array<i64: 1>, scalar_prefetch = 0 : i64, scratch_operands = 0 : i64, tpu.core_type = #tpu.core_type<tc>, window_params = [{transform_indices = @transform_0, window_bounds = array<i64: 256, 3>}, {pipeline_mode = #tpu.pipeline_mode<synchronous>, transform_indices = @transform_1, window_bounds = array<i64: 3, 160>}, {pipeline_mode = #tpu.pipeline_mode<synchronous>, transform_indices = @transform_2, window_bounds = array<i64: 64, 384>}, {pipeline_mode = #tpu.pipeline_mode<synchronous>, transform_indices = @transform_3, window_bounds = array<i64: 32, 256>}, {pipeline_mode = #tpu.pipeline_mode<synchronous>, transform_indices = @transform_4, window_bounds = array<i64: 1, 1152>}, {transform_indices = @transform_5, window_bounds = array<i64: 1, 256>}]} {
    %c0 = arith.constant 0 : index
    %c0_0 = arith.constant 0 : index
    %0 = vector.load %arg1[%c0, %c0_0] : memref<256x3xf32, #tpu.memory_space<vmem>>, vector<256x3xf32>
    %c0_1 = arith.constant 0 : index
    %c0_2 = arith.constant 0 : index
    %1 = vector.load %arg2[%c0_1, %c0_2] : memref<3x160xf32, #tpu.memory_space<vmem>>, vector<3x160xf32>
    %cst = arith.constant dense<0.000000e+00> : vector<256x160xf32>
    %2 = tpu.matmul %0, %1, %cst {dimension_numbers = #tpu.dot_dimension_numbers<[1], [0], [0], [1], [0, 0, 1, 1], [], []>} : vector<256x3xf32>, vector<3x160xf32>, vector<256x160xf32> -> vector<256x160xf32>
    %c0_3 = arith.constant 0 : index
    %c0_4 = arith.constant 0 : index
    %3 = vector.load %arg5[%c0_3, %c0_4] : memref<1x1152xf32, #tpu.memory_space<vmem>>, vector<1x160xf32>
    %4 = vector.broadcast %3 : vector<1x160xf32> to vector<256x160xf32>
    %5 = arith.addf %2, %4 : vector<256x160xf32>
    %cst_5 = arith.constant 0.000000e+00 : f32
    %6 = vector.broadcast %cst_5 : f32 to vector<256x160xf32>
    %7 = arith.maximumf %5, %6 : vector<256x160xf32>
    %8 = vector.extract_strided_slice %7 {offsets = [0, 0], sizes = [256, 64], strides = [1, 1]} : vector<256x160xf32> to vector<256x64xf32>
    %9 = vector.extract_strided_slice %7 {offsets = [0, 128], sizes = [256, 32], strides = [1, 1]} : vector<256x160xf32> to vector<256x32xf32>
    %c0_6 = arith.constant 0 : index
    %c0_7 = arith.constant 0 : index
    %10 = vector.load %arg3[%c0_6, %c0_7] : memref<64x384xf32, #tpu.memory_space<vmem>>, vector<64x128xf32>
    %cst_8 = arith.constant dense<0.000000e+00> : vector<256x128xf32>
    %11 = tpu.matmul %8, %10, %cst_8 {dimension_numbers = #tpu.dot_dimension_numbers<[1], [0], [0], [1], [0, 0, 1, 1], [], []>} : vector<256x64xf32>, vector<64x128xf32>, vector<256x128xf32> -> vector<256x128xf32>
    %c0_9 = arith.constant 0 : index
    %c256 = arith.constant 256 : index
    %12 = vector.load %arg5[%c0_9, %c256] : memref<1x1152xf32, #tpu.memory_space<vmem>>, vector<1x128xf32>
    %13 = vector.broadcast %12 : vector<1x128xf32> to vector<256x128xf32>
    %14 = arith.addf %11, %13 : vector<256x128xf32>
    %15 = vector.extract_strided_slice %14 {offsets = [0, 0], sizes = [256, 32], strides = [1, 1]} : vector<256x128xf32> to vector<256x32xf32>
    %16 = vector.extract_strided_slice %14 {offsets = [0, 32], sizes = [256, 32], strides = [1, 1]} : vector<256x128xf32> to vector<256x32xf32>
    %17 = arith.mulf %15, %9 : vector<256x32xf32>
    %18 = arith.addf %17, %16 : vector<256x32xf32>
    %c0_10 = arith.constant 0 : index
    %c0_11 = arith.constant 0 : index
    %19 = vector.load %arg4[%c0_10, %c0_11] : memref<32x256xf32, #tpu.memory_space<vmem>>, vector<32x32xf32>
    %c0_12 = arith.constant 0 : index
    %c640 = arith.constant 640 : index
    %20 = vector.load %arg5[%c0_12, %c640] : memref<1x1152xf32, #tpu.memory_space<vmem>>, vector<1x32xf32>
    %cst_13 = arith.constant dense<0.000000e+00> : vector<256x32xf32>
    %21 = tpu.matmul %18, %19, %cst_13 {dimension_numbers = #tpu.dot_dimension_numbers<[1], [0], [0], [1], [0, 0, 1, 1], [], []>} : vector<256x32xf32>, vector<32x32xf32>, vector<256x32xf32> -> vector<256x32xf32>
    %22 = vector.broadcast %20 : vector<1x32xf32> to vector<256x32xf32>
    %23 = arith.addf %21, %22 : vector<256x32xf32>
    %cst_14 = arith.constant 0.000000e+00 : f32
    %24 = vector.broadcast %cst_14 : f32 to vector<256x32xf32>
    %25 = arith.maximumf %23, %24 : vector<256x32xf32>
    %c0_15 = arith.constant 0 : index
    %c128 = arith.constant 128 : index
    %26 = vector.load %arg3[%c0_15, %c128] : memref<64x384xf32, #tpu.memory_space<vmem>>, vector<64x128xf32>
    %cst_16 = arith.constant dense<0.000000e+00> : vector<256x128xf32>
    %27 = tpu.matmul %8, %26, %cst_16 {dimension_numbers = #tpu.dot_dimension_numbers<[1], [0], [0], [1], [0, 0, 1, 1], [], []>} : vector<256x64xf32>, vector<64x128xf32>, vector<256x128xf32> -> vector<256x128xf32>
    %c0_17 = arith.constant 0 : index
    %c384 = arith.constant 384 : index
    %28 = vector.load %arg5[%c0_17, %c384] : memref<1x1152xf32, #tpu.memory_space<vmem>>, vector<1x128xf32>
    %29 = vector.broadcast %28 : vector<1x128xf32> to vector<256x128xf32>
    %30 = arith.addf %27, %29 : vector<256x128xf32>
    %31 = vector.extract_strided_slice %30 {offsets = [0, 0], sizes = [256, 32], strides = [1, 1]} : vector<256x128xf32> to vector<256x32xf32>
    %32 = vector.extract_strided_slice %30 {offsets = [0, 32], sizes = [256, 32], strides = [1, 1]} : vector<256x128xf32> to vector<256x32xf32>
    %33 = arith.mulf %31, %25 : vector<256x32xf32>
    %34 = arith.addf %33, %32 : vector<256x32xf32>
    %c0_18 = arith.constant 0 : index
    %c128_19 = arith.constant 128 : index
    %35 = vector.load %arg4[%c0_18, %c128_19] : memref<32x256xf32, #tpu.memory_space<vmem>>, vector<32x32xf32>
    %c0_20 = arith.constant 0 : index
    %c768 = arith.constant 768 : index
    %36 = vector.load %arg5[%c0_20, %c768] : memref<1x1152xf32, #tpu.memory_space<vmem>>, vector<1x32xf32>
    %cst_21 = arith.constant dense<0.000000e+00> : vector<256x32xf32>
    %37 = tpu.matmul %34, %35, %cst_21 {dimension_numbers = #tpu.dot_dimension_numbers<[1], [0], [0], [1], [0, 0, 1, 1], [], []>} : vector<256x32xf32>, vector<32x32xf32>, vector<256x32xf32> -> vector<256x32xf32>
    %38 = vector.broadcast %36 : vector<1x32xf32> to vector<256x32xf32>
    %39 = arith.addf %37, %38 : vector<256x32xf32>
    %cst_22 = arith.constant 0.000000e+00 : f32
    %40 = vector.broadcast %cst_22 : f32 to vector<256x32xf32>
    %41 = arith.maximumf %39, %40 : vector<256x32xf32>
    %c0_23 = arith.constant 0 : index
    %c256_24 = arith.constant 256 : index
    %42 = vector.load %arg3[%c0_23, %c256_24] : memref<64x384xf32, #tpu.memory_space<vmem>>, vector<64x128xf32>
    %cst_25 = arith.constant dense<0.000000e+00> : vector<256x128xf32>
    %43 = tpu.matmul %8, %42, %cst_25 {dimension_numbers = #tpu.dot_dimension_numbers<[1], [0], [0], [1], [0, 0, 1, 1], [], []>} : vector<256x64xf32>, vector<64x128xf32>, vector<256x128xf32> -> vector<256x128xf32>
    %c0_26 = arith.constant 0 : index
    %c512 = arith.constant 512 : index
    %44 = vector.load %arg5[%c0_26, %c512] : memref<1x1152xf32, #tpu.memory_space<vmem>>, vector<1x128xf32>
    %45 = vector.broadcast %44 : vector<1x128xf32> to vector<256x128xf32>
    %46 = arith.addf %43, %45 : vector<256x128xf32>
    %47 = vector.extract_strided_slice %46 {offsets = [0, 0], sizes = [256, 32], strides = [1, 1]} : vector<256x128xf32> to vector<256x32xf32>
    %48 = vector.extract_strided_slice %46 {offsets = [0, 32], sizes = [256, 32], strides = [1, 1]} : vector<256x128xf32> to vector<256x32xf32>
    %49 = arith.mulf %47, %41 : vector<256x32xf32>
    %50 = arith.addf %49, %48 : vector<256x32xf32>
    %c0_27 = arith.constant 0 : index
    %c896 = arith.constant 896 : index
    %51 = vector.load %arg5[%c0_27, %c896] : memref<1x1152xf32, #tpu.memory_space<vmem>>, vector<1x32xf32>
    %c0_28 = arith.constant 0 : index
    %c1024 = arith.constant 1024 : index
    %52 = vector.load %arg5[%c0_28, %c1024] : memref<1x1152xf32, #tpu.memory_space<vmem>>, vector<1x1xf32>
    %53 = tpu.transpose %50, [1, 0] : vector<256x32xf32> -> vector<32x256xf32>
    %cst_29 = arith.constant dense<0.000000e+00> : vector<1x256xf32>
    %54 = tpu.matmul %51, %53, %cst_29 {dimension_numbers = #tpu.dot_dimension_numbers<[1], [0], [0], [1], [0, 0, 1, 1], [], []>} : vector<1x32xf32>, vector<32x256xf32>, vector<1x256xf32> -> vector<1x256xf32>
    %55 = vector.broadcast %52 : vector<1x1xf32> to vector<1x256xf32>
    %56 = arith.addf %54, %55 : vector<1x256xf32>
    %c0_30 = arith.constant 0 : index
    %c0_31 = arith.constant 0 : index
    %57 = vector.load %arg6[%c0_30, %c0_31] : memref<1x256xf32, #tpu.memory_space<vmem>>, vector<1x256xf32>
    tpu.vector_store %arg6[%c0_30, %c0_31], %56 {strides = array<i32>} : memref<1x256xf32, #tpu.memory_space<vmem>>, vector<1x256xf32>,
    return
  }
  func.func @transform_0(%arg0: i32) -> (i32, i32) {
    %c0_i32 = arith.constant 0 : i32
    %c0_i32_0 = arith.constant 0 : i32
    return %arg0, %c0_i32 : i32, i32
  }
  func.func @transform_1(%arg0: i32) -> (i32, i32) {
    %c0_i32 = arith.constant 0 : i32
    %c0_i32_0 = arith.constant 0 : i32
    %c0_i32_1 = arith.constant 0 : i32
    return %c0_i32, %c0_i32_0 : i32, i32
  }
  func.func @transform_2(%arg0: i32) -> (i32, i32) {
    %c0_i32 = arith.constant 0 : i32
    %c0_i32_0 = arith.constant 0 : i32
    %c0_i32_1 = arith.constant 0 : i32
    return %c0_i32, %c0_i32_0 : i32, i32
  }
  func.func @transform_3(%arg0: i32) -> (i32, i32) {
    %c0_i32 = arith.constant 0 : i32
    %c0_i32_0 = arith.constant 0 : i32
    %c0_i32_1 = arith.constant 0 : i32
    return %c0_i32, %c0_i32_0 : i32, i32
  }
  func.func @transform_4(%arg0: i32) -> (i32, i32) {
    %c0_i32 = arith.constant 0 : i32
    %c0_i32_0 = arith.constant 0 : i32
    %c0_i32_1 = arith.constant 0 : i32
    return %c0_i32, %c0_i32_0 : i32, i32
  }
  func.func @transform_5(%arg0: i32) -> (i32, i32) {
    %c0_i32 = arith.constant 0 : i32
    %c0_i32_0 = arith.constant 0 : i32
    return %c0_i32, %arg0 : i32, i32
  }
}

</mosaic_0001>

<bundles_post_ra>
// kernel: modulator_forward_pallas.1
= control target key start
LH: loop header
LB: loop body
LE: loop exit
PB: predicated region body
PF: predicated region fallthrough
CT: control target
= control target key end

     0   :  { %vm165_vm0 = vcmask 1042432   ;;  %v3738_v2 = vmov 0.0   ;;  %vm68_vm1 = vcmask 23552   ;;  %s5517_s0 = inlined_call_operand.vmem [shape: f32[256,3], index: 0, kind: input, shape index: {}]   ;;  %s5518_s1 = inlined_call_operand.vmem [shape: f32[3,160], index: 1, kind: input, shape index: {}]   ;;  %s5519_s2 = inlined_call_operand.vmem [shape: f32[64,384], index: 2, kind: input, shape index: {}]   ;;  %s5520_s3 = inlined_call_operand.vmem [shape: f32[32,256], index: 3, kind: input, shape index: {}]   ;;  %s5521_s4 = inlined_call_operand.vmem [shape: f32[1,1152], index: 4, kind: input, shape index: {}]   ;;  %s5522_s5 = inlined_call_operand.hbm [shape: f32[1,256], index: 5, kind: output, shape index: {}]  }
   0x1   :  { %v53_v0 = vld [vmem:[%s5518_s1] sm:$0x77]  ;;  %234 = vmatprep.mubr.f32.mxu0 %v3738_v2  ;;  %384 = vmatprep.mubr.f32.mxu1 %v3738_v2  ;;  %v22_v4 = vld [vmem:[%s5517_s0 + $0x8] sm:$0xff]  ;;  %v23_v6 = vld [vmem:[%s5517_s0 + $0x10] sm:$0xff] }
   0x2   :  { %v67_v1 = vcombine.high %v53_v0, %v53_v0  ;;  %v21_v3 = vld [vmem:[%s5517_s0] sm:$0xff]  ;;  %v46_v5 = vld [vmem:[%s5517_s0 + $0xc8] sm:$0xff]  ;;  %v47_v7 = vld [vmem:[%s5517_s0 + $0xd0] sm:$0xff] }
   0x3   :  { %v491_v8 = vld [vmem:[%s5519_s2] sm:$0xff]  ;;  %v492_v9 = vld [vmem:[%s5519_s2 + $0x18] sm:$0xff]  ;;  %v1385_v11 = vld [vmem:[%s5519_s2 + $0x8] sm:$0xff] }
   0x4   :  { %2831 = vmatprep.subr.msk.mxu0 %vm165_vm0, %v67_v1  ;;  %3705 = vmatprep.subr.msk.mxu1 %vm165_vm0, %v67_v1  ;;  %v3593_v10 = vpack.c.bf16 %v492_v9, %v491_v8  ;;  %v1386_v12 = vld [vmem:[%s5519_s2 + $0x20] sm:$0xff]  ;;  %v493_v13 = vld [vmem:[%s5519_s2 + $0x30] sm:$0xff]  ;;  %v494_v15 = vld [vmem:[%s5519_s2 + $0x48] sm:$0xff] }
   0x5   :  { %2832 = vmatpush1.msk.msra.mxu0 %vm165_vm0, %v53_v0  ;;  %3706 = vmatpush1.msk.msra.mxu1 %vm165_vm0, %v53_v0  ;;  %v3617_v14 = vpack.c.bf16 %v1386_v12, %v1385_v11  ;;  %v1387_v16 = vld [vmem:[%s5519_s2 + $0x38] sm:$0xff]  ;;  %v1388_v17 = vld [vmem:[%s5519_s2 + $0x50] sm:$0xff] }
   0x6   :  { %2833 = vmatmul.mubr.msk.f32.vlgmr.msra.gmra.mrb[0].mxu0 %vm68_vm1, %v21_v3  ;;  %2858 = vmatmul.mubr.msk.f32.vlgmr.msra.gmra.mrb[0].mxu1 %vm68_vm1, %v46_v5  ;;  %v24_v18 = vld [vmem:[%s5517_s0 + $0x18] sm:$0xff] }
   0x7   :  { %240 = vmatprep.mubr.f32.mxu0 %v3738_v2  ;;  %390 = vmatprep.mubr.f32.mxu1 %v3738_v2  ;;  %v48_v19 = vld [vmem:[%s5517_s0 + $0xd8] sm:$0xff] }
   0xa   :  { %2834 = vmatmul.mubr.msk.f32.gmra.mrb[2].mxu0 %vm68_vm1, %v22_v4  ;;  %2859 = vmatmul.mubr.msk.f32.gmra.mrb[2].mxu1 %vm68_vm1, %v47_v7 }
   0xb   :  { %246 = vmatprep.mubr.f32.mxu0 %v3738_v2  ;;  %396 = vmatprep.mubr.f32.mxu1 %v3738_v2 }
   0xe   :  { %2835 = vmatmul.mubr.msk.f32.gmra.mrb[4].mxu0 %vm68_vm1, %v23_v6 }
   0xf   :  { %252 = vmatprep.mubr.f32.mxu0 %v3738_v2 }
  0x10   :  { %10 = vsyncpa [#allocation3], 0  ;;  %3594 = vmatprep.subr.bf16.mxu1 %v3593_v10  ;;  %3618 = vmatprep.subr.bf16.mxu0 %v3617_v14  ;;  %v3597_v20 = vpack.c.bf16 %v494_v15, %v493_v13  ;;  %v3621_v21 = vpack.c.bf16 %v1388_v17, %v1387_v16  ;;  %v25_v22 = vld [vmem:[%s5517_s0 + $0x20] sm:$0xff]  ;;  %v26_v24 = vld [vmem:[%s5517_s0 + $0x28] sm:$0xff]  ;;  %v5523_v62 = vlaneseq  ;;  %vm506_vm2 = vcmask 523264   ;;  %s3739_s12 = smov 96  }
  0x11   :  { %3596 = vmatpush3.bf16.msra.mxu1 %v3593_v10  ;;  %3620 = vmatpush3.bf16.msra.mxu0 %v3617_v14  ;;  %v49_v23 = vld [vmem:[%s5517_s0 + $0xe0] sm:$0xff]  ;;  %v50_v25 = vld [vmem:[%s5517_s0 + $0xe8] sm:$0xff]  ;;  %v27_v26 = vld [vmem:[%s5517_s0 + $0x30] sm:$0xff]  ;;  %vm1031_vm3 = vcmask 261120  }
  0x12   :  { %2836 = vmatmul.mubr.msk.f32.gmra.mrb[6].mxu0 %vm68_vm1, %v24_v18  ;;  %2860 = vmatmul.mubr.msk.f32.gmra.mrb[4].mxu1 %vm68_vm1, %v48_v19  ;;  %v51_v27 = vld [vmem:[%s5517_s0 + $0xf0] sm:$0xff]  ;;  %v28_v28 = vld [vmem:[%s5517_s0 + $0x38] sm:$0xff]  ;;  %v29_v30 = vld [vmem:[%s5517_s0 + $0x40] sm:$0xff]  ;;  %v3991_v63 = vshrl.u32 %v5523_v62, 7 }
  0x13   :  { %258 = vmatprep.mubr.f32.mxu0 %v3738_v2  ;;  %402 = vmatprep.mubr.f32.mxu1 %v3738_v2  ;;  %v52_v29 = vld [vmem:[%s5517_s0 + $0xf8] sm:$0xff]  ;;  %v30_v31 = vld [vmem:[%s5517_s0 + $0x48] sm:$0xff]  ;;  %v31_v32 = vld [vmem:[%s5517_s0 + $0x50] sm:$0xff] }
  0x14   :  { %3598 = vmatprep.subr.bf16.mxu1 %v3597_v20  ;;  %3622 = vmatprep.subr.bf16.mxu0 %v3621_v21  ;;  %v32_v33 = vld [vmem:[%s5517_s0 + $0x58] sm:$0xff]  ;;  %v33_v34 = vld [vmem:[%s5517_s0 + $0x60] sm:$0xff]  ;;  %v34_v35 = vld [vmem:[%s5517_s0 + $0x68] sm:$0xff]  ;;  %5544 = vst [vmem:[#allocation5_spill] sm:$0xff] %v3991_v63  ;;  %v5524_v0 = vsub.s32 0, %v3991_v63 }
  0x15   :  { %3600 = vmatpush3.bf16.msra.mxu1 %v3597_v20  ;;  %3624 = vmatpush3.bf16.msra.mxu0 %v3621_v21  ;;  %v35_v36 = vld [vmem:[%s5517_s0 + $0x70] sm:$0xff]  ;;  %v36_v37 = vld [vmem:[%s5517_s0 + $0x78] sm:$0xff]  ;;  %v37_v38 = vld [vmem:[%s5517_s0 + $0x80] sm:$0xff] }
  0x16   :  { %2837 = vmatmul.mubr.msk.f32.gmra.mrb[8].mxu0 %vm68_vm1, %v25_v22  ;;  %2861 = vmatmul.mubr.msk.f32.gmra.mrb[6].mxu1 %vm68_vm1, %v49_v23  ;;  %v38_v39 = vld [vmem:[%s5517_s0 + $0x88] sm:$0xff]  ;;  %v39_v40 = vld [vmem:[%s5517_s0 + $0x90] sm:$0xff]  ;;  %v40_v41 = vld [vmem:[%s5517_s0 + $0x98] sm:$0xff] }
  0x17   :  { %264 = vmatprep.mubr.f32.mxu0 %v3738_v2  ;;  %408 = vmatprep.mubr.f32.mxu1 %v3738_v2  ;;  %v41_v42 = vld [vmem:[%s5517_s0 + $0xa0] sm:$0xff]  ;;  %v42_v43 = vld [vmem:[%s5517_s0 + $0xa8] sm:$0xff]  ;;  %v496_v45 = vld [vmem:[%s5519_s2 + $0x78] sm:$0xff] }
  0x18   :  { %v495_v44 = vld [vmem:[%s5519_s2 + $0x60] sm:$0xff]  ;;  %v1389_v46 = vld [vmem:[%s5519_s2 + $0x68] sm:$0xff]  ;;  %v43_v50 = vld [vmem:[%s5517_s0 + $0xb0] sm:$0xff] }
  0x19   :  { %v3601_v47 = vpack.c.bf16 %v496_v45, %v495_v44  ;;  %v1390_v48 = vld [vmem:[%s5519_s2 + $0x80] sm:$0xff]  ;;  %v497_v51 = vld [vmem:[%s5519_s2 + $0x90] sm:$0xff]  ;;  %v498_v52 = vld [vmem:[%s5519_s2 + $0xa8] sm:$0xff] }
  0x1a   :  { %2838 = vmatmul.mubr.msk.f32.gmra.mrb[10].mxu0 %vm68_vm1, %v26_v24  ;;  %2862 = vmatmul.mubr.msk.f32.gmra.mrb[8].mxu1 %vm68_vm1, %v50_v25  ;;  %v3625_v49 = vpack.c.bf16 %v1390_v48, %v1389_v46  ;;  %v1391_v53 = vld [vmem:[%s5519_s2 + $0x98] sm:$0xff]  ;;  %v3605_v54 = vpack.c.bf16 %v498_v52, %v497_v51  ;;  %v1392_v55 = vld [vmem:[%s5519_s2 + $0xb0] sm:$0xff]  ;;  %v45_v58 = vld [vmem:[%s5517_s0 + $0xc0] sm:$0xff] }
  0x1b   :  { %270 = vmatprep.mubr.f32.mxu0 %v3738_v2  ;;  %414 = vmatprep.mubr.f32.mxu1 %v3738_v2  ;;  %v3629_v56 = vpack.c.bf16 %v1392_v55, %v1391_v53  ;;  %v44_v57 = vld [vmem:[%s5517_s0 + $0xb8] sm:$0xff]  ;;  %v2181_v59 = vld [vmem:[%s5519_s2 + $0x10] sm:$0xff]  ;;  %v2182_v60 = vld [vmem:[%s5519_s2 + $0x28] sm:$0xff] }
  0x1c   :  { %3602 = vmatprep.subr.bf16.mxu1 %v3601_v47  ;;  %3626 = vmatprep.subr.bf16.mxu0 %v3625_v49  ;;  %v3641_v61 = vpack.c.bf16 %v2182_v60, %v2181_v59  ;;  %v3997_v1 = vld [vmem:[%s5521_s4] sm:$0x3]  ;;  %v2184_v10 = vld [vmem:[%s5519_s2 + $0x58] sm:$0xff]  ;;  %v2185_v18 = vld [vmem:[%s5519_s2 + $0x70] sm:$0xff] }
  0x1d   :  { %3604 = vmatpush3.bf16.msra.mxu1 %v3601_v47  ;;  %3628 = vmatpush3.bf16.msra.mxu0 %v3625_v49  ;;  %v2183_v9 = vld [vmem:[%s5519_s2 + $0x40] sm:$0xff]  ;;  %v2186_v19 = vld [vmem:[%s5519_s2 + $0x88] sm:$0xff]  ;;  %vm5398_vm4 = vmpackc.low %vm1031_vm3, %vm1031_vm3 }
  0x1e   :  { %2839 = vmatmul.mubr.msk.f32.gmra.mrb[12].mxu0 %vm68_vm1, %v27_v26  ;;  %2863 = vmatmul.mubr.msk.f32.gmra.mrb[10].mxu1 %vm68_vm1, %v51_v27  ;;  %v3645_v15 = vpack.c.bf16 %v2184_v10, %v2183_v9  ;;  %v3649_v24 = vpack.c.bf16 %v2186_v19, %v2185_v18  ;;  %v2187_v27 = vld [vmem:[%s5519_s2 + $0xa0] sm:$0xff] }
  0x1f   :  { %276 = vmatprep.mubr.f32.mxu0 %v3738_v2  ;;  %420 = vmatprep.mubr.f32.mxu1 %v3738_v2 }
  0x20   :  { %3606 = vmatprep.subr.bf16.mxu1 %v3605_v54  ;;  %3630 = vmatprep.subr.bf16.mxu0 %v3629_v56 }
  0x21   :  { %3608 = vmatpush3.bf16.msra.mxu1 %v3605_v54  ;;  %3632 = vmatpush3.bf16.msra.mxu0 %v3629_v56 }
  0x22   :  { %2840 = vmatmul.mubr.msk.f32.gmra.mrb[14].mxu0 %vm68_vm1, %v28_v28  ;;  %2864 = vmatmul.mubr.msk.f32.gmra.mrb[12].mxu1 %vm68_vm1, %v52_v29  ;;  %v2188_v28 = vld [vmem:[%s5519_s2 + $0xb8] sm:$0xff] }
  0x23   :  { %282 = vmatprep.mubr.f32.mxu0 %v3738_v2  ;;  %3642 = vmatprep.subr.bf16.mxu0 %v3641_v61 }
  0x26   :  { %2841 = vmatmul.mubr.msk.f32.gmra.mrb[16].mxu0 %vm68_vm1, %v29_v30 }
  0x27   :  { %288 = vmatprep.mubr.f32.mxu0 %v3738_v2 }
  0x2a   :  { %2842 = vmatmul.mubr.msk.f32.gmra.mrb[18].mxu0 %vm68_vm1, %v30_v31 }
  0x2b   :  { %294 = vmatprep.mubr.f32.mxu0 %v3738_v2 }
  0x2e   :  { %2843 = vmatmul.mubr.msk.f32.gmra.mrb[20].mxu0 %vm68_vm1, %v31_v32 }
  0x2f   :  { %300 = vmatprep.mubr.f32.mxu0 %v3738_v2 }
  0x32   :  { %2844 = vmatmul.mubr.msk.f32.gmra.mrb[22].mxu0 %vm68_vm1, %v32_v33  ;;  %v3653_v33 = vpack.c.bf16 %v2188_v28, %v2187_v27 }
  0x33   :  { %306 = vmatprep.mubr.f32.mxu0 %v3738_v2 }
  0x36   :  { %2845 = vmatmul.mubr.msk.f32.gmra.mrb[24].mxu0 %vm68_vm1, %v33_v34 }
  0x37   :  { %312 = vmatprep.mubr.f32.mxu0 %v3738_v2 }
  0x3a   :  { %2846 = vmatmul.mubr.msk.f32.gmra.mrb[26].mxu0 %vm68_vm1, %v34_v35 }
  0x3b   :  { %318 = vmatprep.mubr.f32.mxu0 %v3738_v2 }
  0x3e   :  { %2847 = vmatmul.mubr.msk.f32.gmra.mrb[28].mxu0 %vm68_vm1, %v35_v36 }
  0x3f   :  { %324 = vmatprep.mubr.f32.mxu0 %v3738_v2 }
  0x42   :  { %2848 = vmatmul.mubr.msk.f32.gmra.mrb[30].mxu0 %vm68_vm1, %v36_v37 }
  0x43   :  { %330 = vmatprep.mubr.f32.mxu0 %v3738_v2 }
  0x46   :  { %2849 = vmatmul.mubr.msk.f32.gmra.mrb[32].mxu0 %vm68_vm1, %v37_v38 }
  0x47   :  { %336 = vmatprep.mubr.f32.mxu0 %v3738_v2 }
  0x4a   :  { %2850 = vmatmul.mubr.msk.f32.gmra.mrb[34].mxu0 %vm68_vm1, %v38_v39 }
  0x4b   :  { %342 = vmatprep.mubr.f32.mxu0 %v3738_v2 }
  0x4e   :  { %2851 = vmatmul.mubr.msk.f32.gmra.mrb[36].mxu0 %vm68_vm1, %v39_v40 }
  0x4f   :  { %348 = vmatprep.mubr.f32.mxu0 %v3738_v2 }
  0x52   :  { %2852 = vmatmul.mubr.msk.f32.gmra.mrb[38].mxu0 %vm68_vm1, %v40_v41 }
  0x53   :  { %354 = vmatprep.mubr.f32.mxu0 %v3738_v2 }
  0x56   :  { %2853 = vmatmul.mubr.msk.f32.gmra.mrb[40].mxu0 %vm68_vm1, %v41_v42 }
  0x57   :  { %360 = vmatprep.mubr.f32.mxu0 %v3738_v2 }
  0x5a   :  { %2854 = vmatmul.mubr.msk.f32.gmra.mrb[42].mxu0 %vm68_vm1, %v42_v43 }
  0x5b   :  { %366 = vmatprep.mubr.f32.mxu0 %v3738_v2 }
  0x5e   :  { %2855 = vmatmul.mubr.msk.f32.gmra.mrb[44].mxu0 %vm68_vm1, %v43_v50 }
  0x5f   :  { %372 = vmatprep.mubr.f32.mxu0 %v3738_v2 }
  0x62   :  { %2856 = vmatmul.mubr.msk.f32.gmra.mrb[46].mxu0 %vm68_vm1, %v44_v57 }
  0x63   :  { %378 = vmatprep.mubr.f32.mxu0 %v3738_v2  ;;  %v4002_v2 = vrot.slane %v3997_v1, %v5524_v0 }
  0x66   :  { %2857 = vmatmul.mubr.msk.f32.gmra.mrb[48].mxu0 %vm68_vm1, %v45_v58 }
  0xd9   :  { %v236_v3 = vpop.f32.mrb[0].mxu0  ;;  %v4009_v8 = vpop.f32.mrb[0].mxu1 }
  0xda   :  { %v237_v4 = vadd.f32 %v236_v3, %v4002_v2  ;;  %v4005_v5 = vpop.f32.mrb[1].mxu0  ;;  %v4024_v13 = vpop.f32.mrb[1].mxu1 }
  0xdb   :  { %5545 = vst [vmem:[#allocation6_spill] sm:$0xff] %v4024_v13 }
  0xdc   :  { %v4007_v6 = vmax.f32 %v237_v4, 0.0 }
  0xdd   :  { %v242_v7 = vpop.f32.mrb[2].mxu0  ;;  %v4028_v17 = vpop.f32.mrb[2].mxu1 }
  0xde   :  { %v243_v11 = vadd.f32 %v242_v7, %v4002_v2  ;;  %v4018_v12 = vpop.f32.mrb[3].mxu0  ;;  %3305 = vmatprep.mubr.msk.f32.mxu1 %vm506_vm2, %v4007_v6  ;;  %3425 = vmatprep.mubr.msk.f32.mxu0 %vm506_vm2, %v4007_v6  ;;  %v4043_v22 = vpop.f32.mrb[3].mxu1 }
  0xdf   :  { %5546 = vst [vmem:[#allocation7_spill] sm:$0xff] %v4043_v22 }
  0xe0   :  { %v4026_v14 = vmax.f32 %v243_v11, 0.0 }
  0xe1   :  { %v248_v16 = vpop.f32.mrb[4].mxu0 }
  0xe2   :  { %v249_v20 = vadd.f32 %v248_v16, %v4002_v2  ;;  %v4037_v21 = vpop.f32.mrb[5].mxu0  ;;  %3306 = vmatmul.mubr.msk.f32.vlgmr.msra.gmra.mrb[14].mxu1 %vm506_vm2, %v4026_v14  ;;  %3426 = vmatmul.mubr.msk.f32.vlgmr.msra.gmra.mrb[50].mxu0 %vm506_vm2, %v4026_v14 }
  0xe3   :  { %3644 = vmatpush3.bf16.msra.mxu0 %v3641_v61 }
  0xe4   :  { %v4045_v23 = vmax.f32 %v249_v20, 0.0  ;;  %3646 = vmatprep.subr.bf16.mxu0 %v3645_v15 }
  0xe5   :  { %v254_v25 = vpop.f32.mrb[6].mxu0  ;;  %v4047_v26 = vpop.f32.mrb[4].mxu1 }
  0xe6   :  { %v255_v29 = vadd.f32 %v254_v25, %v4002_v2  ;;  %v4056_v30 = vpop.f32.mrb[7].mxu0  ;;  %3308 = vmatprep.mubr.msk.f32.mxu1 %vm506_vm2, %v4045_v23  ;;  %3428 = vmatprep.mubr.msk.f32.mxu0 %vm506_vm2, %v4045_v23  ;;  %v4062_v31 = vpop.f32.mrb[5].mxu1 }
  0xe7   :  { %5547 = vst [vmem:[#allocation8_spill] sm:$0xff] %v4062_v31  ;;  %3648 = vmatpush3.bf16.msra.mxu0 %v3645_v15  ;;  %v393_v31 = vadd.f32 %v4028_v17, %v4002_v2 }
  0xe8   :  { %v4064_v32 = vmax.f32 %v255_v29, 0.0  ;;  %3650 = vmatprep.subr.bf16.mxu0 %v3649_v24 }
  0xe9   :  { %v260_v34 = vpop.f32.mrb[8].mxu0  ;;  %v4066_v35 = vpop.f32.mrb[6].mxu1 }
  0xea   :  { %v261_v36 = vadd.f32 %v260_v34, %v4002_v2  ;;  %v4069_v37 = vpop.f32.mrb[9].mxu0  ;;  %3309 = vmatmul.mubr.msk.f32.gmra.mrb[16].mxu1 %vm506_vm2, %v4064_v32  ;;  %3429 = vmatmul.mubr.msk.f32.gmra.mrb[52].mxu0 %vm506_vm2, %v4064_v32  ;;  %v4075_v38 = vpop.f32.mrb[7].mxu1 }
  0xeb   :  { %5548 = vst [vmem:[#allocation9_spill] sm:$0xff] %v4075_v38  ;;  %3652 = vmatpush3.bf16.msra.mxu0 %v3649_v24 }
  0xec   :  { %v4077_v39 = vmax.f32 %v261_v36, 0.0  ;;  %3654 = vmatprep.subr.bf16.mxu0 %v3653_v33 }
  0xed   :  { %v266_v40 = vpop.f32.mrb[10].mxu0  ;;  %v4079_v41 = vpop.f32.mrb[8].mxu1 }
  0xee   :  { %v267_v42 = vadd.f32 %v266_v40, %v4002_v2  ;;  %v4082_v43 = vpop.f32.mrb[11].mxu0  ;;  %3311 = vmatprep.mubr.msk.f32.mxu1 %vm506_vm2, %v4077_v39  ;;  %3431 = vmatprep.mubr.msk.f32.mxu0 %vm506_vm2, %v4077_v39  ;;  %v4088_v44 = vpop.f32.mrb[9].mxu1 }
  0xef   :  { %5549 = vst [vmem:[#allocation10_spill] sm:$0xff] %v4088_v44  ;;  %3656 = vmatpush3.bf16.msra.mxu0 %v3653_v33 }
  0xf0   :  { %v4090_v45 = vmax.f32 %v267_v42, 0.0 }
  0xf1   :  { %v272_v46 = vpop.f32.mrb[12].mxu0  ;;  %v4092_v47 = vpop.f32.mrb[10].mxu1 }
  0xf2   :  { %v273_v48 = vadd.f32 %v272_v46, %v4002_v2  ;;  %v4095_v49 = vpop.f32.mrb[13].mxu0  ;;  %3312 = vmatmul.mubr.msk.f32.gmra.mrb[18].mxu1 %vm506_vm2, %v4090_v45  ;;  %3432 = vmatmul.mubr.msk.f32.gmra.mrb[54].mxu0 %vm506_vm2, %v4090_v45  ;;  %v4101_v50 = vpop.f32.mrb[11].mxu1 }
  0xf3   :  { %5550 = vst [vmem:[#allocation11_spill] sm:$0xff] %v4101_v50 }
  0xf4   :  { %v4103_v51 = vmax.f32 %v273_v48, 0.0 }
  0xf5   :  { %v278_v52 = vpop.f32.mrb[14].mxu0  ;;  %v4105_v53 = vpop.f32.mrb[12].mxu1 }
  0xf6   :  { %v279_v54 = vadd.f32 %v278_v52, %v4002_v2  ;;  %v4108_v55 = vpop.f32.mrb[15].mxu0  ;;  %3314 = vmatprep.mubr.msk.f32.mxu1 %vm506_vm2, %v4103_v51  ;;  %3434 = vmatprep.mubr.msk.f32.mxu0 %vm506_vm2, %v4103_v51  ;;  %v4114_v56 = vpop.f32.mrb[13].mxu1 }
  0xf7   :  { %5551 = vst [vmem:[#allocation12_spill] sm:$0xff] %v4114_v56 }
  0xf8   :  { %v4116_v57 = vmax.f32 %v279_v54, 0.0 }
  0xf9   :  { %v284_v58 = vpop.f32.mrb[16].mxu0 }
  0xfa   :  { %v285_v59 = vadd.f32 %v284_v58, %v4002_v2  ;;  %v4119_v60 = vpop.f32.mrb[17].mxu0  ;;  %3315 = vmatmul.mubr.msk.f32.gmra.mrb[20].mxu1 %vm506_vm2, %v4116_v57  ;;  %3435 = vmatmul.mubr.msk.f32.gmra.mrb[56].mxu0 %vm506_vm2, %v4116_v57 }
  0xfc   :  { %v4125_v61 = vmax.f32 %v285_v59, 0.0 }
  0xfd   :  { %v290_v3 = vpop.f32.mrb[18].mxu0 }
  0xfe   :  { %v291_v4 = vadd.f32 %v290_v3, %v4002_v2  ;;  %v4128_v7 = vpop.f32.mrb[19].mxu0  ;;  %3317 = vmatprep.mubr.msk.f32.mxu1 %vm506_vm2, %v4125_v61  ;;  %3437 = vmatprep.mubr.msk.f32.mxu0 %vm506_vm2, %v4125_v61 }
 0x100   :  { %v4134_v9 = vmax.f32 %v291_v4, 0.0 }
 0x101   :  { %v296_v10 = vpop.f32.mrb[20].mxu0 }
 0x102   :  { %v297_v11 = vadd.f32 %v296_v10, %v4002_v2  ;;  %v4137_v15 = vpop.f32.mrb[21].mxu0  ;;  %3318 = vmatmul.mubr.msk.f32.gmra.mrb[22].mxu1 %vm506_vm2, %v4134_v9  ;;  %3438 = vmatmul.mubr.msk.f32.gmra.mrb[58].mxu0 %vm506_vm2, %v4134_v9 }
 0x104   :  { %v4143_v16 = vmax.f32 %v297_v11, 0.0 }
 0x105   :  { %v302_v18 = vpop.f32.mrb[22].mxu0 }
 0x106   :  { %v303_v19 = vadd.f32 %v302_v18, %v4002_v2  ;;  %v4146_v20 = vpop.f32.mrb[23].mxu0  ;;  %3320 = vmatprep.mubr.msk.f32.mxu1 %vm506_vm2, %v4143_v16  ;;  %3440 = vmatprep.mubr.msk.f32.mxu0 %vm506_vm2, %v4143_v16 }
 0x108   :  { %v4152_v24 = vmax.f32 %v303_v19, 0.0 }
 0x109   :  { %v308_v25 = vpop.f32.mrb[24].mxu0 }
 0x10a   :  { %v309_v27 = vadd.f32 %v308_v25, %v4002_v2  ;;  %v4155_v28 = vpop.f32.mrb[25].mxu0  ;;  %3321 = vmatmul.mubr.msk.f32.gmra.mrb[24].mxu1 %vm506_vm2, %v4152_v24  ;;  %3441 = vmatmul.mubr.msk.f32.gmra.mrb[60].mxu0 %vm506_vm2, %v4152_v24 }
 0x10c   :  { %v4161_v29 = vmax.f32 %v309_v27, 0.0 }
 0x10d   :  { %v314_v33 = vpop.f32.mrb[26].mxu0 }
 0x10e   :  { %v315_v34 = vadd.f32 %v314_v33, %v4002_v2  ;;  %v4164_v36 = vpop.f32.mrb[27].mxu0  ;;  %3323 = vmatprep.mubr.msk.f32.mxu1 %vm506_vm2, %v4161_v29  ;;  %3443 = vmatprep.mubr.msk.f32.mxu0 %vm506_vm2, %v4161_v29 }
 0x110   :  { %v4170_v40 = vmax.f32 %v315_v34, 0.0 }
 0x111   :  { %v320_v42 = vpop.f32.mrb[28].mxu0 }
 0x112   :  { %v321_v46 = vadd.f32 %v320_v42, %v4002_v2  ;;  %v4173_v48 = vpop.f32.mrb[29].mxu0  ;;  %3324 = vmatmul.mubr.msk.f32.gmra.mrb[26].mxu1 %vm506_vm2, %v4170_v40  ;;  %3444 = vmatmul.mubr.msk.f32.gmra.mrb[62].mxu0 %vm506_vm2, %v4170_v40 }
 0x114   :  { %v4179_v52 = vmax.f32 %v321_v46, 0.0 }
 0x115   :  { %v326_v54 = vpop.f32.mrb[30].mxu0 }
 0x116   :  { %v327_v58 = vadd.f32 %v326_v54, %v4002_v2  ;;  %v4182_v59 = vpop.f32.mrb[31].mxu0  ;;  %3326 = vmatprep.mubr.msk.f32.mxu1 %vm506_vm2, %v4179_v52  ;;  %3446 = vmatprep.mubr.msk.f32.mxu0 %vm506_vm2, %v4179_v52 }
 0x118   :  { %v4188_v3 = vmax.f32 %v327_v58, 0.0 }
 0x119   :  { %v332_v4 = vpop.f32.mrb[32].mxu0 }
 0x11a   :  { %v333_v10 = vadd.f32 %v332_v4, %v4002_v2  ;;  %v4191_v11 = vpop.f32.mrb[33].mxu0  ;;  %3327 = vmatmul.mubr.msk.f32.gmra.mrb[28].mxu1 %vm506_vm2, %v4188_v3  ;;  %3447 = vmatmul.mubr.msk.f32.gmra.mrb[64].mxu0 %vm506_vm2, %v4188_v3 }
 0x11c   :  { %v4197_v18 = vmax.f32 %v333_v10, 0.0 }
 0x11d   :  { %v338_v19 = vpop.f32.mrb[34].mxu0 }
 0x11e   :  { %v339_v25 = vadd.f32 %v338_v19, %v4002_v2  ;;  %v4200_v27 = vpop.f32.mrb[35].mxu0  ;;  %3329 = vmatprep.mubr.msk.f32.mxu1 %vm506_vm2, %v4197_v18  ;;  %3449 = vmatprep.mubr.msk.f32.mxu0 %vm506_vm2, %v4197_v18 }
 0x120   :  { %v4206_v33 = vmax.f32 %v339_v25, 0.0 }
 0x121   :  { %v344_v34 = vpop.f32.mrb[36].mxu0 }
 0x122   :  { %v345_v42 = vadd.f32 %v344_v34, %v4002_v2  ;;  %v4209_v46 = vpop.f32.mrb[37].mxu0  ;;  %3330 = vmatmul.mubr.msk.f32.gmra.mrb[30].mxu1 %vm506_vm2, %v4206_v33  ;;  %3450 = vmatmul.mubr.msk.f32.gmra.mrb[66].mxu0 %vm506_vm2, %v4206_v33 }
 0x124   :  { %v4215_v54 = vmax.f32 %v345_v42, 0.0 }
 0x125   :  { %v350_v58 = vpop.f32.mrb[38].mxu0 }
 0x126   :  { %v351_v4 = vadd.f32 %v350_v58, %v4002_v2  ;;  %v4218_v10 = vpop.f32.mrb[39].mxu0  ;;  %3332 = vmatprep.mubr.msk.f32.mxu1 %vm506_vm2, %v4215_v54  ;;  %3452 = vmatprep.mubr.msk.f32.mxu0 %vm506_vm2, %v4215_v54 }
 0x128   :  { %v4224_v19 = vmax.f32 %v351_v4, 0.0 }
 0x129   :  { %v356_v25 = vpop.f32.mrb[40].mxu0 }
 0x12a   :  { %v357_v34 = vadd.f32 %v356_v25, %v4002_v2  ;;  %v4227_v62 = vpop.f32.mrb[41].mxu0  ;;  %3333 = vmatmul.mubr.msk.f32.gmra.mrb[32].mxu1 %vm506_vm2, %v4224_v19  ;;  %3453 = vmatmul.mubr.msk.f32.gmra.mrb[68].mxu0 %vm506_vm2, %v4224_v19 }
 0x12b   :  { %5552 = vst [vmem:[#allocation13_spill] sm:$0xff] %v4227_v62 }
 0x12c   :  { %v4233_v42 = vmax.f32 %v357_v34, 0.0 }
 0x12d   :  { %v362_v58 = vpop.f32.mrb[42].mxu0 }
 0x12e   :  { %v363_v0 = vadd.f32 %v362_v58, %v4002_v2  ;;  %v4236_v50 = vpop.f32.mrb[43].mxu0  ;;  %3335 = vmatprep.mubr.msk.f32.mxu1 %vm506_vm2, %v4233_v42  ;;  %3455 = vmatprep.mubr.msk.f32.mxu0 %vm506_vm2, %v4233_v42 }
 0x12f   :  { %5553 = vst [vmem:[#allocation14_spill] sm:$0xff] %v4236_v50  ;;  %v479_v50 = vmax.f32 %v393_v31, 0.0 }
 0x130   :  { %v4242_v4 = vmax.f32 %v363_v0, 0.0  ;;  %v387_v0 = vadd.f32 %v4009_v8, %v4002_v2  ;;  %v405_v8 = vadd.f32 %v4066_v35, %v4002_v2 }
 0x131   :  { %v368_v25 = vpop.f32.mrb[44].mxu0 }
 0x132   :  { %v369_v56 = vadd.f32 %v368_v25, %v4002_v2  ;;  %v4245_v38 = vpop.f32.mrb[45].mxu0  ;;  %3336 = vmatmul.mubr.msk.f32.gmra.mrb[34].mxu1 %vm506_vm2, %v4242_v4  ;;  %3456 = vmatmul.mubr.msk.f32.gmra.mrb[70].mxu0 %vm506_vm2, %v4242_v4 }
 0x133   :  { %5554 = vst [vmem:[#allocation15_spill] sm:$0xff] %v4245_v38  ;;  %v477_v38 = vmax.f32 %v387_v0, 0.0  ;;  %v483_v0 = vmax.f32 %v405_v8, 0.0 }
 0x134   :  { %v4251_v34 = vmax.f32 %v369_v56, 0.0 }
 0x135   :  { %v374_v58 = vpop.f32.mrb[46].mxu0 }
 0x136   :  { %v375_v44 = vadd.f32 %v374_v58, %v4002_v2  ;;  %v4254_v22 = vpop.f32.mrb[47].mxu0  ;;  %3338 = vmatprep.mubr.msk.f32.mxu1 %vm506_vm2, %v4251_v34  ;;  %3458 = vmatprep.mubr.msk.f32.mxu0 %vm506_vm2, %v4251_v34 }
 0x137   :  { %5555 = vst [vmem:[#allocation16_spill] sm:$0xff] %v4254_v22  ;;  %v399_v22 = vadd.f32 %v4047_v26, %v4002_v2 }
 0x138   :  { %v473_v25 = vmax.f32 %v375_v44, 0.0  ;;  %v411_v44 = vadd.f32 %v4079_v41, %v4002_v2 }
 0x139   :  { %v380_v56 = vpop.f32.mrb[48].mxu0  ;;  %v481_v17 = vmax.f32 %v399_v22, 0.0  ;;  %v423_v22 = vadd.f32 %v4105_v53, %v4002_v2 }
 0x13a   :  { %v381_v13 = vadd.f32 %v380_v56, %v4002_v2  ;;  %3339 = vmatmul.mubr.msk.f32.gmra.mrb[36].mxu1 %vm506_vm2, %v473_v25  ;;  %3459 = vmatmul.mubr.msk.f32.gmra.mrb[72].mxu0 %vm506_vm2, %v473_v25  ;;  %v4267_v58 = vpop.f32.mrb[49].mxu0  ;;  %v485_v26 = vmax.f32 %v411_v44, 0.0 }
 0x13b   :  { %v489_v35 = vmax.f32 %v423_v22, 0.0 }
 0x13c   :  { %v475_v62 = vmax.f32 %v381_v13, 0.0  ;;  %v417_v13 = vadd.f32 %v4092_v47, %v4002_v2  ;;  %v1020_v2 = vld [vmem:[%s5520_s3] sm:$0xff] }
 0x13d   :  { %v4373_v47 = vld [vmem:[%s5521_s4 + $0x2] ss:$0 sm:$0xff] }
 0x13e   :  { %3341 = vmatprep.mubr.msk.f32.mxu1 %vm506_vm2, %v475_v62  ;;  %3461 = vmatprep.mubr.msk.f32.mxu0 %vm506_vm2, %v475_v62  ;;  %v487_v31 = vmax.f32 %v417_v13, 0.0 }
 0x13f   :  { %3342 = vmatmul.mubr.msk.f32.gmra.mrb[38].mxu1 %vm506_vm2, %v477_v38  ;;  %3462 = vmatmul.mubr.msk.f32.gmra.mrb[74].mxu0 %vm506_vm2, %v477_v38 }
 0x140   :  { %3344 = vmatprep.mubr.msk.f32.mxu1 %vm506_vm2, %v479_v50  ;;  %3464 = vmatprep.mubr.msk.f32.mxu0 %vm506_vm2, %v479_v50 }
 0x143   :  { %3345 = vmatmul.mubr.msk.f32.gmra.mrb[40].mxu1 %vm506_vm2, %v481_v17  ;;  %3465 = vmatmul.mubr.msk.f32.gmra.mrb[76].mxu0 %vm506_vm2, %v481_v17 }
 0x144   :  { %3347 = vmatprep.mubr.msk.f32.mxu1 %vm506_vm2, %v483_v0  ;;  %3467 = vmatprep.mubr.msk.f32.mxu0 %vm506_vm2, %v483_v0 }
 0x147   :  { %3348 = vmatmul.mubr.msk.f32.gmra.mrb[42].mxu1 %vm506_vm2, %v485_v26  ;;  %3468 = vmatmul.mubr.msk.f32.gmra.mrb[78].mxu0 %vm506_vm2, %v485_v26 }
 0x148   :  { %3350 = vmatprep.mubr.msk.f32.mxu1 %vm506_vm2, %v487_v31  ;;  %3470 = vmatprep.mubr.msk.f32.mxu0 %vm506_vm2, %v487_v31 }
 0x14b   :  { %3351 = vmatmul.mubr.msk.f32.gmra.mrb[44].mxu1 %vm506_vm2, %v489_v35  ;;  %3471 = vmatmul.mubr.msk.f32.gmra.mrb[80].mxu0 %vm506_vm2, %v489_v35 }
 0x14c   :  { %3545 = vmatprep.mubr.msk.f32.mxu0 %vm506_vm2, %v4007_v6 }
 0x14f   :  { %3546 = vmatmul.mubr.msk.f32.vlgmr.msra.gmra.mrb[82].mxu0 %vm506_vm2, %v4026_v14  ;;  %v62_v14 = vsub.s32 1, %v3991_v63 }
 0x150   :  { %3548 = vmatprep.mubr.msk.f32.mxu0 %vm506_vm2, %v4045_v23  ;;  %v1022_v23 = vld [vmem:[%s5520_s3 + $0x20] sm:$0xff] }
 0x153   :  { %3549 = vmatmul.mubr.msk.f32.gmra.mrb[84].mxu0 %vm506_vm2, %v4064_v32  ;;  %v1023_v32 = vld [vmem:[%s5520_s3 + $0x30] sm:$0xff] }
 0x154   :  { %3551 = vmatprep.mubr.msk.f32.mxu0 %vm506_vm2, %v4077_v39  ;;  %v4364_v39 = vrot.slane %v3997_v1, %v62_v14 }
 0x156   :  { %v245_v41 = vadd.f32 %v4018_v12, %v4364_v39 }
 0x157   :  { %3552 = vmatmul.mubr.msk.f32.gmra.mrb[86].mxu0 %vm506_vm2, %v4090_v45  ;;  %v239_v45 = vadd.f32 %v4005_v5, %v4364_v39 }
 0x158   :  { %3554 = vmatprep.mubr.msk.f32.mxu0 %vm506_vm2, %v4103_v51  ;;  %v430_v53 = vmax.f32 %v245_v41, 0.0 }
 0x15b   :  { %3555 = vmatmul.mubr.msk.f32.gmra.mrb[88].mxu0 %vm506_vm2, %v4116_v57 }
 0x15c   :  { %3557 = vmatprep.mubr.msk.f32.mxu0 %vm506_vm2, %v4125_v61 }
 0x15f   :  { %3558 = vmatmul.mubr.msk.f32.gmra.mrb[90].mxu0 %vm506_vm2, %v4134_v9  ;;  %v428_v9 = vmax.f32 %v239_v45, 0.0  ;;  %v287_v45 = vadd.f32 %v4119_v60, %v4364_v39  ;;  %v305_v60 = vadd.f32 %v4146_v20, %v4364_v39 }
 0x160   :  { %3560 = vmatprep.mubr.msk.f32.mxu0 %vm506_vm2, %v4143_v16 }
 0x163   :  { %3561 = vmatmul.mubr.msk.f32.gmra.mrb[92].mxu0 %vm506_vm2, %v4152_v24  ;;  %v257_v24 = vadd.f32 %v4056_v30, %v4364_v39 }
 0x164   :  { %3563 = vmatprep.mubr.msk.f32.mxu0 %vm506_vm2, %v4161_v29  ;;  %v251_v29 = vadd.f32 %v4037_v21, %v4364_v39  ;;  %v269_v21 = vadd.f32 %v4082_v43, %v4364_v39  ;;  %v281_v43 = vadd.f32 %v4108_v55, %v4364_v39 }
 0x166   :  { %v438_v8 = vmax.f32 %v269_v21, 0.0 }
 0x167   :  { %3564 = vmatmul.mubr.msk.f32.gmra.mrb[94].mxu0 %vm506_vm2, %v4170_v40 }
 0x168   :  { %3566 = vmatprep.mubr.msk.f32.mxu0 %vm506_vm2, %v4179_v52 }
 0x16b   :  { %3567 = vmatmul.mubr.msk.f32.gmra.mrb[96].mxu0 %vm506_vm2, %v4188_v3  ;;  %v434_v3 = vmax.f32 %v257_v24, 0.0  ;;  %v444_v24 = vmax.f32 %v287_v45, 0.0 }
 0x16c   :  { %3569 = vmatprep.mubr.msk.f32.mxu0 %vm506_vm2, %v4197_v18 }
 0x16f   :  { %3570 = vmatmul.mubr.msk.f32.gmra.mrb[98].mxu0 %vm506_vm2, %v4206_v33 }
 0x170   :  { %3572 = vmatprep.mubr.msk.f32.mxu0 %vm506_vm2, %v4215_v54 }
 0x173   :  { %3573 = vmatmul.mubr.msk.f32.gmra.mrb[100].mxu0 %vm506_vm2, %v4224_v19  ;;  %v432_v19 = vmax.f32 %v251_v29, 0.0 }
 0x174   :  { %3575 = vmatprep.mubr.msk.f32.mxu0 %vm506_vm2, %v4233_v42 }
 0x177   :  { %3576 = vmatmul.mubr.msk.f32.gmra.mrb[102].mxu0 %vm506_vm2, %v4242_v4 }
 0x178   :  { %3578 = vmatprep.mubr.msk.f32.mxu0 %vm506_vm2, %v4251_v34  ;;  %v263_v34 = vadd.f32 %v4069_v37, %v4364_v39 }
 0x17a   :  { %v436_v13 = vmax.f32 %v263_v34, 0.0 }
 0x17b   :  { %3579 = vmatmul.mubr.msk.f32.gmra.mrb[104].mxu0 %vm506_vm2, %v473_v25 }
 0x17c   :  { %3581 = vmatprep.mubr.msk.f32.mxu0 %vm506_vm2, %v475_v62  ;;  %v1021_v62 = vld [vmem:[%s5520_s3 + $0x10] sm:$0xff] }
 0x17d   :  { %v3609_v6 = vpack.c.bf16 %v1021_v62, %v1020_v2  ;;  %v442_v62 = vmax.f32 %v281_v43, 0.0 }
 0x17f   :  { %3582 = vmatmul.mubr.msk.f32.gmra.mrb[106].mxu0 %vm506_vm2, %v477_v38  ;;  %3610 = vmatprep.subr.bf16.mxu1 %v3609_v6  ;;  %v3613_v38 = vpack.c.bf16 %v1023_v32, %v1022_v23 }
 0x180   :  { %3584 = vmatprep.mubr.msk.f32.mxu0 %vm506_vm2, %v479_v50  ;;  %3612 = vmatpush3.bf16.msra.mxu1 %v3609_v6 }
 0x181   :  { %3614 = vmatprep.subr.bf16.mxu1 %v3613_v38 }
 0x183   :  { %3585 = vmatmul.mubr.msk.f32.gmra.mrb[108].mxu0 %vm506_vm2, %v481_v17 }
 0x184   :  { %3587 = vmatprep.mubr.msk.f32.mxu0 %vm506_vm2, %v483_v0  ;;  %3616 = vmatpush3.bf16.msra.mxu1 %v3613_v38 }
 0x187   :  { %3588 = vmatmul.mubr.msk.f32.gmra.mrb[110].mxu0 %vm506_vm2, %v485_v26 }
 0x188   :  { %3590 = vmatprep.mubr.msk.f32.mxu0 %vm506_vm2, %v487_v31  ;;  %v275_v31 = vadd.f32 %v4095_v49, %v4364_v39  ;;  %v293_v49 = vadd.f32 %v4128_v7, %v4364_v39 }
 0x18a   :  { %v440_v32 = vmax.f32 %v275_v31, 0.0 }
 0x18b   :  { %3591 = vmatmul.mubr.msk.f32.gmra.mrb[112].mxu0 %vm506_vm2, %v489_v35 }
 0x1b5   :  { %v3307_v50 = vpop.f32.mrb[14].mxu1  ;;  %v4375_v51 = vpop.f32.mrb[50].mxu0 }
 0x1b6   :  { %v675_v57 = vadd.f32 %v3307_v50, %v4373_v47  ;;  %v669_v1 = vpop.f32.mrb[15].mxu1  ;;  %v4378_v61 = vpop.f32.mrb[51].mxu0 }
 0x1b7   :  { %v670_v12 = vadd.f32 %v4373_v47, %v669_v1 }
 0x1b8   :  { %v4381_v16 = vmul.f32 %v675_v57, %v430_v53 }
 0x1b9   :  { %892 = vrot.lane.b32.xlu0 %v670_v12, %s3739_s12  ;;  %v4384_v5 = vmul.f32 %v670_v12, %v428_v9 }
 0x1bd   :  { %v3310_v40 = vpop.f32.mrb[16].mxu1  ;;  %v4390_v52 = vpop.f32.mrb[52].mxu0  ;;  %894 = vrot.lane.b32.xlu0 %v675_v57, %s3739_s12  ;;  %v446_v57 = vmax.f32 %v293_v49, 0.0 }
 0x1be   :  { %v685_v18 = vadd.f32 %v3310_v40, %v4373_v47  ;;  %v679_v33 = vpop.f32.mrb[17].mxu1  ;;  %v4394_v54 = vpop.f32.mrb[53].mxu0 }
 0x1bf   :  { %v680_v42 = vadd.f32 %v4373_v47, %v679_v33 }
 0x1c0   :  { %v4397_v4 = vmul.f32 %v685_v18, %v434_v3  ;;  %v299_v3 = vadd.f32 %v4137_v15, %v4364_v39  ;;  %v317_v15 = vadd.f32 %v4164_v36, %v4364_v39 }
 0x1c1   :  { %896 = vrot.lane.b32.xlu1 %v680_v42, %s3739_s12  ;;  %v4400_v30 = vmul.f32 %v680_v42, %v432_v19  ;;  %v450_v19 = vmax.f32 %v305_v60, 0.0 }
 0x1c2   :  { %v454_v43 = vmax.f32 %v317_v15, 0.0 }
 0x1c5   :  { %v3313_v25 = vpop.f32.mrb[18].mxu1  ;;  %v4406_v56 = vpop.f32.mrb[54].mxu0  ;;  %898 = vrot.lane.b32.xlu1 %v685_v18, %s3739_s12 }
 0x1c6   :  { %v695_v17 = vadd.f32 %v3313_v25, %v4373_v47  ;;  %v689_v44 = vpop.f32.mrb[19].mxu1  ;;  %v4410_v0 = vpop.f32.mrb[55].mxu0  ;;  %v448_v25 = vmax.f32 %v299_v3, 0.0  ;;  %v335_v3 = vadd.f32 %v4191_v11, %v4364_v39  ;;  %v353_v11 = vadd.f32 %v4218_v10, %v4364_v39 }
 0x1c7   :  { %v690_v26 = vadd.f32 %v4373_v47, %v689_v44  ;;  %v311_v44 = vadd.f32 %v4155_v28, %v4364_v39  ;;  %v329_v28 = vadd.f32 %v4182_v59, %v4364_v39 }
 0x1c8   :  { %v4413_v22 = vmul.f32 %v695_v17, %v438_v8  ;;  %v460_v15 = vmax.f32 %v335_v3, 0.0 }
 0x1c9   :  { %902 = vrot.lane.b32.xlu1 %v695_v17, %s3739_s12  ;;  %900 = vrot.lane.b32.xlu0 %v690_v26, %s3739_s12  ;;  %v4417_v37 = vmul.f32 %v690_v26, %v436_v13 }
 0x1cd   :  { %v3316_v35 = vpop.f32.mrb[20].mxu1  ;;  %v4423_v2 = vpop.f32.mrb[56].mxu0 }
 0x1ce   :  { %v705_v6 = vadd.f32 %v3316_v35, %v4373_v47  ;;  %v699_v14 = vpop.f32.mrb[21].mxu1  ;;  %v4426_v23 = vpop.f32.mrb[57].mxu0 }
 0x1cf   :  { %v700_v38 = vadd.f32 %v4373_v47, %v699_v14 }
 0x1d0   :  { %906 = vrot.lane.b32.xlu1 %v705_v6, %s3739_s12  ;;  %v4430_v41 = vmul.f32 %v705_v6, %v442_v62  ;;  %v452_v6 = vmax.f32 %v311_v44, 0.0 }
 0x1d1   :  { %904 = vrot.lane.b32.xlu0 %v700_v38, %s3739_s12  ;;  %v4433_v55 = vmul.f32 %v700_v38, %v440_v32  ;;  %v323_v38 = vadd.f32 %v4173_v48, %v4364_v39  ;;  %v341_v48 = vadd.f32 %v4200_v27, %v4364_v39 }
 0x1d5   :  { %v3319_v50 = vpop.f32.mrb[22].mxu1  ;;  %v4439_v53 = vpop.f32.mrb[58].mxu0 }
 0x1d6   :  { %v715_v1 = vadd.f32 %v3319_v50, %v4373_v47  ;;  %v709_v9 = vpop.f32.mrb[23].mxu1  ;;  %v4442_v12 = vpop.f32.mrb[59].mxu0  ;;  %v458_v50 = vmax.f32 %v329_v28, 0.0 }
 0x1d7   :  { %v710_v29 = vadd.f32 %v4373_v47, %v709_v9 }
 0x1d8   :  { %910 = vrot.lane.b32.xlu1 %v715_v1, %s3739_s12  ;;  %v4446_v40 = vmul.f32 %v715_v1, %v446_v57 }
 0x1d9   :  { %908 = vrot.lane.b32.xlu0 %v710_v29, %s3739_s12  ;;  %v4449_v7 = vmul.f32 %v710_v29, %v444_v24  ;;  %v456_v24 = vmax.f32 %v323_v38, 0.0 }
 0x1dd   :  { %v3322_v18 = vpop.f32.mrb[24].mxu1  ;;  %v4455_v33 = vpop.f32.mrb[60].mxu0 }
 0x1de   :  { %v725_v42 = vadd.f32 %v3322_v18, %v4373_v47  ;;  %v719_v21 = vpop.f32.mrb[25].mxu1  ;;  %v4458_v34 = vpop.f32.mrb[61].mxu0 }
 0x1df   :  { %v720_v8 = vadd.f32 %v4373_v47, %v719_v21 }
 0x1e0   :  { %914 = vrot.lane.b32.xlu1 %v725_v42, %s3739_s12  ;;  %v4462_v17 = vmul.f32 %v725_v42, %v450_v19  ;;  %v462_v42 = vmax.f32 %v341_v48, 0.0 }
 0x1e1   :  { %912 = vrot.lane.b32.xlu0 %v720_v8, %s3739_s12  ;;  %v4465_v20 = vmul.f32 %v720_v8, %v448_v25 }
 0x1e5   :  { %v3325_v13 = vpop.f32.mrb[26].mxu1  ;;  %v4471_v26 = vpop.f32.mrb[62].mxu0 }
 0x1e6   :  { %v735_v31 = vadd.f32 %v3325_v13, %v4373_v47  ;;  %v729_v35 = vpop.f32.mrb[27].mxu1  ;;  %v4474_v62 = vpop.f32.mrb[63].mxu0 }
 0x1e7   :  { %v730_v14 = vadd.f32 %v4373_v47, %v729_v35 }
 0x1e8   :  { %918 = vrot.lane.b32.xlu1 %v735_v31, %s3739_s12  ;;  %v4478_v32 = vmul.f32 %v735_v31, %v454_v43  ;;  %v347_v43 = vadd.f32 %v4209_v46, %v4364_v39  ;;  %v5560_v46 = vld [vmem:[#allocation14_spill] sm:$0xff] }
 0x1e9   :  { %916 = vrot.lane.b32.xlu0 %v730_v14, %s3739_s12  ;;  %v4481_v36 = vmul.f32 %v730_v14, %v452_v6  ;;  %v466_v6 = vmax.f32 %v353_v11, 0.0 }
 0x1ed   :  { %v3328_v49 = vpop.f32.mrb[28].mxu1  ;;  %v4487_v45 = vpop.f32.mrb[64].mxu0 }
 0x1ee   :  { %v745_v57 = vadd.f32 %v3328_v49, %v4373_v47  ;;  %v739_v1 = vpop.f32.mrb[29].mxu1  ;;  %v4490_v9 = vpop.f32.mrb[65].mxu0  ;;  %v464_v49 = vmax.f32 %v347_v43, 0.0 }
 0x1ef   :  { %v740_v29 = vadd.f32 %v4373_v47, %v739_v1  ;;  %v365_v1 = vadd.f32 %v5560_v46, %v4364_v39 }
 0x1f0   :  { %922 = vrot.lane.b32.xlu1 %v745_v57, %s3739_s12  ;;  %v4494_v60 = vmul.f32 %v745_v57, %v458_v50 }
 0x1f1   :  { %920 = vrot.lane.b32.xlu0 %v740_v29, %s3739_s12  ;;  %v4497_v59 = vmul.f32 %v740_v29, %v456_v24  ;;  %v5561_v24 = vld [vmem:[#allocation13_spill] sm:$0xff] }
 0x1f2   :  { %v359_v29 = vadd.f32 %v5561_v24, %v4364_v39 }
 0x1f5   :  { %v3331_v18 = vpop.f32.mrb[30].mxu1  ;;  %v4503_v19 = vpop.f32.mrb[66].mxu0 }
 0x1f6   :  { %v755_v21 = vadd.f32 %v3331_v18, %v4373_v47  ;;  %v749_v25 = vpop.f32.mrb[31].mxu1  ;;  %v4506_v8 = vpop.f32.mrb[67].mxu0  ;;  %v470_v18 = vmax.f32 %v365_v1, 0.0 }
 0x1f7   :  { %v750_v44 = vadd.f32 %v4373_v47, %v749_v25 }
 0x1f8   :  { %926 = vrot.lane.b32.xlu1 %v755_v21, %s3739_s12  ;;  %v4510_v13 = vmul.f32 %v755_v21, %v462_v42 }
 0x1f9   :  { %924 = vrot.lane.b32.xlu0 %v750_v44, %s3739_s12  ;;  %v4513_v27 = vmul.f32 %v750_v44, %v460_v15  ;;  %v468_v15 = vmax.f32 %v359_v29, 0.0 }
 0x1fa   :  { %5556 = vst [vmem:[#allocation17_spill] sm:$0xff] %v4510_v13 }
 0x1fb   :  { %5557 = vst [vmem:[#allocation18_spill] sm:$0xff] %v4513_v27 }
 0x1fd   :  { %v3334_v31 = vpop.f32.mrb[32].mxu1  ;;  %v4519_v35 = vpop.f32.mrb[68].mxu0 }
 0x1fe   :  { %v765_v14 = vadd.f32 %v3334_v31, %v4373_v47  ;;  %v759_v28 = vpop.f32.mrb[33].mxu1  ;;  %v4522_v38 = vpop.f32.mrb[69].mxu0  ;;  %v5564_v31 = vld [vmem:[#allocation16_spill] sm:$0xff] }
 0x1ff   :  { %v760_v50 = vadd.f32 %v4373_v47, %v759_v28 }
 0x200   :  { %930 = vrot.lane.b32.xlu1 %v765_v14, %s3739_s12  ;;  %v4526_v57 = vmul.f32 %v765_v14, %v466_v6  ;;  %v377_v6 = vadd.f32 %v5564_v31, %v4364_v39  ;;  %v5565_v14 = vld [vmem:[#allocation15_spill] sm:$0xff] }
 0x201   :  { %928 = vrot.lane.b32.xlu0 %v760_v50, %s3739_s12  ;;  %v4529_v10 = vmul.f32 %v760_v50, %v464_v49  ;;  %v371_v28 = vadd.f32 %v5565_v14, %v4364_v39 }
 0x202   :  { %5558 = vst [vmem:[#allocation19_spill] sm:$0xff] %v4526_v57  ;;  %v474_v46 = vmax.f32 %v377_v6, 0.0 }
 0x203   :  { %5559 = vst [vmem:[#allocation20_spill] sm:$0xff] %v4529_v10 }
 0x205   :  { %v3337_v48 = vpop.f32.mrb[34].mxu1  ;;  %v4535_v3 = vpop.f32.mrb[70].mxu0 }
 0x206   :  { %v775_v42 = vadd.f32 %v3337_v48, %v4373_v47  ;;  %v769_v21 = vpop.f32.mrb[35].mxu1  ;;  %v4538_v25 = vpop.f32.mrb[71].mxu0  ;;  %v472_v48 = vmax.f32 %v371_v28, 0.0 }
 0x207   :  { %v770_v44 = vadd.f32 %v4373_v47, %v769_v21 }
 0x208   :  { %934 = vrot.lane.b32.xlu1 %v775_v42, %s3739_s12  ;;  %v4542_v11 = vmul.f32 %v775_v42, %v470_v18  ;;  %v5566_v18 = vld [vmem:[#allocation6_spill] sm:$0xff] }
 0x209   :  { %932 = vrot.lane.b32.xlu0 %v770_v44, %s3739_s12  ;;  %v4545_v43 = vmul.f32 %v770_v44, %v468_v15  ;;  %v389_v42 = vadd.f32 %v5566_v18, %v4364_v39  ;;  %v383_v15 = vadd.f32 %v4267_v58, %v4364_v39 }
 0x20a   :  { %5562 = vst [vmem:[#allocation14_spill] sm:$0xff] %v4542_v11 }
 0x20b   :  { %5563 = vst [vmem:[#allocation13_spill] sm:$0xff] %v4545_v43  ;;  %v478_v28 = vmax.f32 %v389_v42, 0.0  ;;  %v476_v58 = vmax.f32 %v383_v15, 0.0 }
 0x20d   :  { %v3340_v49 = vpop.f32.mrb[36].mxu1  ;;  %v4551_v50 = vpop.f32.mrb[72].mxu0 }
 0x20e   :  { %v785_v1 = vadd.f32 %v3340_v49, %v4373_v47  ;;  %v779_v24 = vpop.f32.mrb[37].mxu1  ;;  %v4554_v29 = vpop.f32.mrb[73].mxu0  ;;  %v5569_v49 = vld [vmem:[#allocation8_spill] sm:$0xff] }
 0x20f   :  { %v780_v21 = vadd.f32 %v4373_v47, %v779_v24  ;;  %v401_v18 = vadd.f32 %v5569_v49, %v4364_v39 }
 0x210   :  { %938 = vrot.lane.b32.xlu1 %v785_v1, %s3739_s12  ;;  %v4562_v44 = vmul.f32 %v785_v1, %v474_v46  ;;  %v5570_v46 = vld [vmem:[#allocation7_spill] sm:$0xff] }
 0x211   :  { %936 = vrot.lane.b32.xlu0 %v780_v21, %s3739_s12  ;;  %v4565_v31 = vmul.f32 %v780_v21, %v472_v48  ;;  %v395_v1 = vadd.f32 %v5570_v46, %v4364_v39 }
 0x212   :  { %5567 = vst [vmem:[#allocation16_spill] sm:$0xff] %v4562_v44  ;;  %v3343_v6 = vpop.f32.mrb[38].mxu1  ;;  %v4567_v14 = vpop.f32.mrb[74].mxu0 }
 0x213   :  { %5568 = vst [vmem:[#allocation15_spill] sm:$0xff] %v4565_v31  ;;  %v795_v24 = vadd.f32 %v3343_v6, %v4373_v47  ;;  %v789_v63 = vpop.f32.mrb[39].mxu1  ;;  %v4572_v11 = vpop.f32.mrb[75].mxu0  ;;  %v482_v6 = vmax.f32 %v401_v18, 0.0  ;;  %v5573_v31 = vld [vmem:[#allocation10_spill] sm:$0xff] }
 0x214   :  { %v790_v44 = vadd.f32 %v4373_v47, %v789_v63  ;;  %v413_v15 = vadd.f32 %v5573_v31, %v4364_v39  ;;  %v480_v63 = vmax.f32 %v395_v1, 0.0 }
 0x215   :  { %942 = vrot.lane.b32.xlu1 %v795_v24, %s3739_s12  ;;  %v4578_v48 = vmul.f32 %v795_v24, %v478_v28  ;;  %v5574_v28 = vld [vmem:[#allocation9_spill] sm:$0xff] }
 0x216   :  { %v3346_v21 = vpop.f32.mrb[40].mxu1  ;;  %940 = vrot.lane.b32.xlu0 %v790_v44, %s3739_s12  ;;  %v4581_v42 = vpop.f32.mrb[76].mxu0  ;;  %v4583_v49 = vmul.f32 %v790_v44, %v476_v58  ;;  %v407_v24 = vadd.f32 %v5574_v28, %v4364_v39  ;;  %v486_v58 = vmax.f32 %v413_v15, 0.0 }
 0x217   :  { %5571 = vst [vmem:[#allocation6_spill] sm:$0xff] %v4578_v48  ;;  %v805_v43 = vadd.f32 %v3346_v21, %v4373_v47  ;;  %v799_v46 = vpop.f32.mrb[41].mxu1  ;;  %v4588_v57 = vpop.f32.mrb[77].mxu0  ;;  %v5577_v21 = vld [vmem:[#allocation12_spill] sm:$0xff] }
 0x218   :  { %5572 = vst [vmem:[#allocation8_spill] sm:$0xff] %v4583_v49  ;;  %v800_v48 = vadd.f32 %v4373_v47, %v799_v46  ;;  %v425_v1 = vadd.f32 %v5577_v21, %v4364_v39  ;;  %v484_v46 = vmax.f32 %v407_v24, 0.0 }
 0x219   :  { %946 = vrot.lane.b32.xlu1 %v805_v43, %s3739_s12  ;;  %v4594_v10 = vmul.f32 %v805_v43, %v482_v6  ;;  %v5578_v43 = vld [vmem:[#allocation11_spill] sm:$0xff] }
 0x21a   :  { %v3349_v44 = vpop.f32.mrb[42].mxu1  ;;  %944 = vrot.lane.b32.xlu0 %v800_v48, %s3739_s12  ;;  %v4597_v18 = vpop.f32.mrb[78].mxu0  ;;  %v4599_v31 = vmul.f32 %v800_v48, %v480_v63  ;;  %v419_v6 = vadd.f32 %v5578_v43, %v4364_v39 }
 0x21b   :  { %5575 = vst [vmem:[#allocation7_spill] sm:$0xff] %v4594_v10  ;;  %v815_v49 = vadd.f32 %v3349_v44, %v4373_v47  ;;  %v809_v28 = vpop.f32.mrb[43].mxu1  ;;  %v4604_v13 = vpop.f32.mrb[79].mxu0  ;;  %v490_v44 = vmax.f32 %v425_v1, 0.0 }
 0x21c   :  { %5576 = vst [vmem:[#allocation10_spill] sm:$0xff] %v4599_v31  ;;  %v810_v10 = vadd.f32 %v4373_v47, %v809_v28  ;;  %v488_v39 = vmax.f32 %v419_v6, 0.0  ;;  %v4623_v28 = vld [vmem:[%s5521_s4 + $0x3] ss:$0 sm:$0xff] }
 0x21d   :  { %950 = vrot.lane.b32.xlu1 %v815_v49, %s3739_s12  ;;  %v4610_v27 = vmul.f32 %v815_v49, %v486_v58  ;;  %v4642_v6 = vadd.f32 %v4623_v28, %v4378_v61 }
 0x21e   :  { %v3352_v48 = vpop.f32.mrb[44].mxu1  ;;  %948 = vrot.lane.b32.xlu0 %v810_v10, %s3739_s12  ;;  %v4613_v15 = vpop.f32.mrb[80].mxu0  ;;  %v4615_v63 = vmul.f32 %v810_v10, %v484_v46  ;;  %v4636_v46 = vadd.f32 %v4375_v51, %v4623_v28 }
 0x21f   :  { %v825_v21 = vadd.f32 %v3352_v48, %v4373_v47  ;;  %v819_v24 = vpop.f32.mrb[45].mxu1  ;;  %v4618_v31 = vpop.f32.mrb[81].mxu0  ;;  %v4652_v48 = vadd.f32 %v4390_v52, %v4623_v28 }
 0x220   :  { %v820_v49 = vadd.f32 %v4373_v47, %v819_v24 }
 0x221   :  { %954 = vrot.lane.b32.xlu1 %v825_v21, %s3739_s12  ;;  %v4627_v58 = vmul.f32 %v825_v21, %v490_v44  ;;  %v4658_v44 = vadd.f32 %v4623_v28, %v4394_v54  ;;  %v4668_v21 = vadd.f32 %v4406_v56, %v4623_v28  ;;  %v4674_v54 = vadd.f32 %v4623_v28, %v4410_v0 }
 0x222   :  { %v4629_v10 = vpop.f32.mrb[82].mxu0  ;;  %952 = vrot.lane.b32.xlu0 %v820_v49, %s3739_s12  ;;  %v4632_v1 = vmul.f32 %v820_v49, %v488_v39  ;;  %v4686_v56 = vadd.f32 %v4423_v2, %v4623_v28  ;;  %v4704_v2 = vadd.f32 %v4439_v53, %v4623_v28  ;;  %v4722_v53 = vadd.f32 %v4455_v33, %v4623_v28 }
 0x223   :  { %v4638_v43 = vpop.f32.mrb[83].mxu0  ;;  %5579 = vst [vmem:[#allocation9_spill] sm:$0xff] %v4658_v44  ;;  %5580 = vst [vmem:[#allocation12_spill] sm:$0xff] %v4668_v21  ;;  %v4740_v33 = vadd.f32 %v4471_v26, %v4623_v28  ;;  %v4758_v26 = vadd.f32 %v4487_v45, %v4623_v28  ;;  %v4776_v45 = vadd.f32 %v4503_v19, %v4623_v28 }
 0x224   :  { %5581 = vst [vmem:[#allocation11_spill] sm:$0xff] %v4686_v56  ;;  %5582 = vst [vmem:[#allocation21_spill] sm:$0xff] %v4704_v2  ;;  %v4795_v19 = vadd.f32 %v4519_v35, %v4623_v28  ;;  %v4812_v35 = vadd.f32 %v4535_v3, %v4623_v28  ;;  %v4831_v3 = vadd.f32 %v4551_v50, %v4623_v28 }
 0x225   :  { %1691 = vrot.lane.b32.xlu1 %v4636_v46, %s3739_s12  ;;  %5584 = vst [vmem:[#allocation23_spill] sm:$0xff] %v4722_v53  ;;  %5586 = vst [vmem:[#allocation25_spill] sm:$0xff] %v4758_v26  ;;  %v4848_v50 = vadd.f32 %v4567_v14, %v4623_v28  ;;  %v4867_v14 = vadd.f32 %v4581_v42, %v4623_v28  ;;  %v4884_v42 = vadd.f32 %v4597_v18, %v4623_v28 }
 0x226   :  { %v4646_v47 = vpop.f32.mrb[84].mxu0  ;;  %1689 = vrot.lane.b32.xlu0 %v4642_v6, %s3739_s12  ;;  %5588 = vst [vmem:[#allocation27_spill] sm:$0xff] %v4795_v19  ;;  %5590 = vst [vmem:[#allocation29_spill] sm:$0xff] %v4831_v3  ;;  %v4903_v18 = vadd.f32 %v4613_v15, %v4623_v28 }
 0x227   :  { %v4654_v51 = vpop.f32.mrb[85].mxu0  ;;  %5592 = vst [vmem:[#allocation31_spill] sm:$0xff] %v4867_v14 }
 0x229   :  { %1695 = vrot.lane.b32.xlu1 %v4652_v48, %s3739_s12 }
 0x22a   :  { %v4662_v61 = vpop.f32.mrb[86].mxu0  ;;  %1693 = vrot.lane.b32.xlu0 %v4658_v44, %s3739_s12 }
 0x22b   :  { %v4670_v52 = vpop.f32.mrb[87].mxu0  ;;  %v893_v24 = vpop.permute.xlu0 %892 }
 0x22c   :  { %v988_v39 = vadd.f32 %v893_v24, %v4384_v5  ;;  %v4692_v5 = vadd.f32 %v4623_v28, %v4426_v23 }
 0x22d   :  { %1699 = vrot.lane.b32.xlu1 %v4668_v21, %s3739_s12 }
 0x22e   :  { %v4679_v49 = vpop.f32.mrb[88].mxu0  ;;  %1697 = vrot.lane.b32.xlu0 %v4674_v54, %s3739_s12  ;;  %3361 = vmatprep.mubr.msk.f32.mxu1 %vm1031_vm3, %v988_v39 }
 0x22f   :  { %v4688_v44 = vpop.f32.mrb[89].mxu0  ;;  %v895_v0 = vpop.permute.xlu0 %894 }
 0x230   :  { %v989_v24 = vadd.f32 %v895_v0, %v4381_v16  ;;  %v4710_v16 = vadd.f32 %v4623_v28, %v4442_v12 }
 0x231   :  { %1703 = vrot.lane.b32.xlu1 %v4686_v56, %s3739_s12 }
 0x232   :  { %v4697_v21 = vpop.f32.mrb[90].mxu0  ;;  %1701 = vrot.lane.b32.xlu0 %v4692_v5, %s3739_s12  ;;  %3362 = vmatmul.mubr.msk.f32.vlgmr.msra.gmra.mrb[46].mxu1 %vm1031_vm3, %v989_v24  ;;  %5583 = vst [vmem:[#allocation22_spill] sm:$0xff] %v4710_v16 }
 0x233   :  { %v4706_v39 = vpop.f32.mrb[91].mxu0  ;;  %v897_v23 = vpop.permute.xlu1 %896 }
 0x234   :  { %v990_v0 = vadd.f32 %v897_v23, %v4400_v30  ;;  %v4728_v30 = vadd.f32 %v4623_v28, %v4458_v34 }
 0x235   :  { %1707 = vrot.lane.b32.xlu1 %v4704_v2, %s3739_s12 }
 0x236   :  { %v4715_v56 = vpop.f32.mrb[92].mxu0  ;;  %1705 = vrot.lane.b32.xlu0 %v4710_v16, %s3739_s12  ;;  %3364 = vmatprep.mubr.msk.f32.mxu1 %vm1031_vm3, %v990_v0 }
 0x237   :  { %v4724_v24 = vpop.f32.mrb[93].mxu0  ;;  %v899_v12 = vpop.permute.xlu1 %898 }
 0x238   :  { %v991_v23 = vadd.f32 %v899_v12, %v4397_v4  ;;  %v4746_v4 = vadd.f32 %v4623_v28, %v4474_v62 }
 0x239   :  { %1711 = vrot.lane.b32.xlu1 %v4722_v53, %s3739_s12 }
 0x23a   :  { %v4733_v2 = vpop.f32.mrb[94].mxu0  ;;  %1709 = vrot.lane.b32.xlu0 %v4728_v30, %s3739_s12  ;;  %3365 = vmatmul.mubr.msk.f32.gmra.mrb[48].mxu1 %vm1031_vm3, %v991_v23  ;;  %5585 = vst [vmem:[#allocation24_spill] sm:$0xff] %v4746_v4 }
 0x23b   :  { %v4742_v0 = vpop.f32.mrb[95].mxu0  ;;  %v903_v34 = vpop.permute.xlu1 %902 }
 0x23c   :  { %v993_v12 = vadd.f32 %v903_v34, %v4413_v22  ;;  %v901_v53 = vpop.permute.xlu0 %900  ;;  %v4765_v22 = vadd.f32 %v4623_v28, %v4490_v9  ;;  %v4782_v9 = vadd.f32 %v4623_v28, %v4506_v8 }
 0x23d   :  { %v992_v16 = vadd.f32 %v901_v53, %v4417_v37  ;;  %1715 = vrot.lane.b32.xlu1 %v4740_v33, %s3739_s12 }
 0x23e   :  { %v4752_v23 = vpop.f32.mrb[96].mxu0  ;;  %1713 = vrot.lane.b32.xlu0 %v4746_v4, %s3739_s12  ;;  %5587 = vst [vmem:[#allocation26_spill] sm:$0xff] %v4782_v9 }
 0x23f   :  { %3367 = vmatprep.mubr.msk.f32.mxu1 %vm1031_vm3, %v992_v16  ;;  %v4761_v62 = vpop.f32.mrb[97].mxu0 }
 0x240   :  { %3368 = vmatmul.mubr.msk.f32.gmra.mrb[50].mxu1 %vm1031_vm3, %v993_v12 }
 0x241   :  { %1719 = vrot.lane.b32.xlu1 %v4758_v26, %s3739_s12 }
 0x242   :  { %v4770_v37 = vpop.f32.mrb[98].mxu0  ;;  %v907_v53 = vpop.permute.xlu1 %906  ;;  %1717 = vrot.lane.b32.xlu0 %v4765_v22, %s3739_s12 }
 0x243   :  { %v4778_v16 = vpop.f32.mrb[99].mxu0  ;;  %v905_v34 = vpop.permute.xlu0 %904  ;;  %v995_v26 = vadd.f32 %v907_v53, %v4430_v41  ;;  %v4802_v41 = vadd.f32 %v4623_v28, %v4522_v38  ;;  %v4818_v38 = vadd.f32 %v4623_v28, %v4538_v25 }
 0x244   :  { %v994_v12 = vadd.f32 %v905_v34, %v4433_v55 }
 0x245   :  { %1723 = vrot.lane.b32.xlu1 %v4776_v45, %s3739_s12  ;;  %5589 = vst [vmem:[#allocation28_spill] sm:$0xff] %v4818_v38 }
 0x246   :  { %v4788_v4 = vpop.f32.mrb[100].mxu0  ;;  %1721 = vrot.lane.b32.xlu0 %v4782_v9, %s3739_s12  ;;  %3370 = vmatprep.mubr.msk.f32.mxu1 %vm1031_vm3, %v994_v12 }
 0x247   :  { %3371 = vmatmul.mubr.msk.f32.gmra.mrb[52].mxu1 %vm1031_vm3, %v995_v26  ;;  %v4798_v8 = vpop.f32.mrb[101].mxu0 }
 0x249   :  { %1727 = vrot.lane.b32.xlu1 %v4795_v19, %s3739_s12 }
 0x24a   :  { %v4806_v55 = vpop.f32.mrb[102].mxu0  ;;  %v911_v53 = vpop.permute.xlu1 %910  ;;  %1725 = vrot.lane.b32.xlu0 %v4802_v41, %s3739_s12 }
 0x24b   :  { %v4814_v26 = vpop.f32.mrb[103].mxu0  ;;  %v909_v34 = vpop.permute.xlu0 %908  ;;  %v997_v19 = vadd.f32 %v911_v53, %v4446_v40  ;;  %v4838_v40 = vadd.f32 %v4623_v28, %v4554_v29  ;;  %v4854_v29 = vadd.f32 %v4623_v28, %v4572_v11 }
 0x24c   :  { %v996_v12 = vadd.f32 %v909_v34, %v4449_v7 }
 0x24d   :  { %1731 = vrot.lane.b32.xlu1 %v4812_v35, %s3739_s12  ;;  %5591 = vst [vmem:[#allocation30_spill] sm:$0xff] %v4854_v29 }
 0x24e   :  { %v4824_v9 = vpop.f32.mrb[104].mxu0  ;;  %1729 = vrot.lane.b32.xlu0 %v4818_v38, %s3739_s12  ;;  %3373 = vmatprep.mubr.msk.f32.mxu1 %vm1031_vm3, %v996_v12 }
 0x24f   :  { %3374 = vmatmul.mubr.msk.f32.gmra.mrb[54].mxu1 %vm1031_vm3, %v997_v19  ;;  %v4834_v25 = vpop.f32.mrb[105].mxu0 }
 0x251   :  { %1735 = vrot.lane.b32.xlu1 %v4831_v3, %s3739_s12 }
 0x252   :  { %v4842_v7 = vpop.f32.mrb[106].mxu0  ;;  %v915_v53 = vpop.permute.xlu1 %914  ;;  %1733 = vrot.lane.b32.xlu0 %v4838_v40, %s3739_s12 }
 0x253   :  { %v4850_v19 = vpop.f32.mrb[107].mxu0  ;;  %v913_v34 = vpop.permute.xlu0 %912  ;;  %v999_v3 = vadd.f32 %v915_v53, %v4462_v17  ;;  %v4874_v17 = vadd.f32 %v4623_v28, %v4588_v57  ;;  %v4890_v57 = vadd.f32 %v4623_v28, %v4604_v13 }
 0x254   :  { %v998_v12 = vadd.f32 %v913_v34, %v4465_v20 }
 0x255   :  { %1739 = vrot.lane.b32.xlu1 %v4848_v50, %s3739_s12 }
 0x256   :  { %v4860_v38 = vpop.f32.mrb[108].mxu0  ;;  %1737 = vrot.lane.b32.xlu0 %v4854_v29, %s3739_s12  ;;  %3376 = vmatprep.mubr.msk.f32.mxu1 %vm1031_vm3, %v998_v12 }
 0x257   :  { %3377 = vmatmul.mubr.msk.f32.gmra.mrb[56].mxu1 %vm1031_vm3, %v999_v3  ;;  %v4870_v11 = vpop.f32.mrb[109].mxu0 }
 0x259   :  { %1743 = vrot.lane.b32.xlu1 %v4867_v14, %s3739_s12 }
 0x25a   :  { %v4878_v20 = vpop.f32.mrb[110].mxu0  ;;  %v919_v53 = vpop.permute.xlu1 %918  ;;  %1741 = vrot.lane.b32.xlu0 %v4874_v17, %s3739_s12 }
 0x25b   :  { %v4886_v3 = vpop.f32.mrb[111].mxu0  ;;  %v917_v34 = vpop.permute.xlu0 %916  ;;  %v1001_v14 = vadd.f32 %v919_v53, %v4478_v32  ;;  %v4910_v32 = vadd.f32 %v4623_v28, %v4618_v31 }
 0x25c   :  { %v1000_v12 = vadd.f32 %v917_v34, %v4481_v36  ;;  %v4917_v36 = vld [vmem:[%s5521_s4 + $0x4] ss:$0 sm:$0xff] }
 0x25d   :  { %1747 = vrot.lane.b32.xlu1 %v4884_v42, %s3739_s12  ;;  %v4923_v15 = vadd.f32 %v4770_v37, %v4917_v36  ;;  %v4927_v31 = vadd.f32 %v4917_v36, %v4778_v16  ;;  %v4938_v37 = vadd.f32 %v4629_v10, %v4917_v36  ;;  %v4943_v16 = vadd.f32 %v4917_v36, %v4638_v43  ;;  %v1817_v43 = vld [vmem:[%s5520_s3 + $0x8] sm:$0xff] }
 0x25e   :  { %v4896_v29 = vpop.f32.mrb[112].mxu0  ;;  %1745 = vrot.lane.b32.xlu0 %v4890_v57, %s3739_s12  ;;  %3379 = vmatprep.mubr.msk.f32.mxu1 %vm1031_vm3, %v1000_v12  ;;  %v4955_v10 = vadd.f32 %v4917_v36, %v4798_v8  ;;  %v4972_v8 = vadd.f32 %v4646_v47, %v4917_v36 }
 0x25f   :  { %3380 = vmatmul.mubr.msk.f32.gmra.mrb[58].mxu1 %vm1031_vm3, %v1001_v14  ;;  %v4906_v13 = vpop.f32.mrb[113].mxu0  ;;  %5593 = vst [vmem:[#allocation32_spill] sm:$0xff] %v4927_v31 }
 0x261   :  { %1751 = vrot.lane.b32.xlu1 %v4903_v18, %s3739_s12 }
 0x262   :  { %v923_v53 = vpop.permute.xlu1 %922  ;;  %1749 = vrot.lane.b32.xlu0 %v4910_v32, %s3739_s12 }
 0x263   :  { %v921_v14 = vpop.permute.xlu0 %920  ;;  %v1003_v34 = vadd.f32 %v923_v53, %v4494_v60  ;;  %v5594_v53 = vld [vmem:[#allocation18_spill] sm:$0xff] }
 0x264   :  { %v1002_v28 = vadd.f32 %v921_v14, %v4497_v59  ;;  %v4951_v59 = vadd.f32 %v4788_v4, %v4917_v36 }
 0x265   :  { %2519 = vrot.lane.b32.xlu1 %v4923_v15, %s3739_s12 }
 0x266   :  { %2517 = vrot.lane.b32.xlu0 %v4927_v31, %s3739_s12  ;;  %3382 = vmatprep.mubr.msk.f32.mxu1 %vm1031_vm3, %v1002_v28  ;;  %v1818_v28 = vld [vmem:[%s5520_s3 + $0x18] sm:$0xff] }
 0x267   :  { %3383 = vmatmul.mubr.msk.f32.gmra.mrb[60].mxu1 %vm1031_vm3, %v1003_v34  ;;  %v5595_v34 = vld [vmem:[#allocation17_spill] sm:$0xff]  ;;  %v3633_v4 = vpack.c.bf16 %v1818_v28, %v1817_v43  ;;  %v5597_v43 = vld [vmem:[#allocation19_spill] sm:$0xff] }
 0x269   :  { %2487 = vrot.lane.b32.xlu1 %v4938_v37, %s3739_s12  ;;  %3634 = vmatprep.subr.bf16.mxu1 %v3633_v4 }
 0x26a   :  { %v927_v60 = vpop.permute.xlu1 %926  ;;  %2485 = vrot.lane.b32.xlu0 %v4943_v16, %s3739_s12  ;;  %3636 = vmatpush3.bf16.msra.mxu1 %v3633_v4  ;;  %v5013_v4 = vadd.f32 %v4824_v9, %v4917_v36  ;;  %v5028_v9 = vadd.f32 %v4679_v49, %v4917_v36  ;;  %v5045_v49 = vadd.f32 %v4917_v36, %v4850_v19 }
 0x26b   :  { %v925_v12 = vpop.permute.xlu0 %924  ;;  %v1005_v31 = vadd.f32 %v927_v60, %v5595_v34  ;;  %v5061_v19 = vadd.f32 %v4917_v36, %v4706_v39  ;;  %v1820_v39 = vld [vmem:[%s5520_s3 + $0x38] sm:$0xff] }
 0x26c   :  { %v1004_v14 = vadd.f32 %v925_v12, %v5594_v53  ;;  %v4977_v12 = vadd.f32 %v4917_v36, %v4654_v51  ;;  %v4985_v53 = vadd.f32 %v4806_v55, %v4917_v36  ;;  %v5000_v55 = vadd.f32 %v4662_v61, %v4917_v36  ;;  %5601 = vst [vmem:[#allocation17_spill] sm:$0xff] %v5045_v49 }
 0x26d   :  { %2523 = vrot.lane.b32.xlu1 %v4951_v59, %s3739_s12  ;;  %v5017_v61 = vadd.f32 %v4917_v36, %v4834_v25  ;;  %v5033_v25 = vadd.f32 %v4917_v36, %v4688_v44  ;;  %v5603_v44 = vld [vmem:[#allocation16_spill] sm:$0xff] }
 0x26e   :  { %2521 = vrot.lane.b32.xlu0 %v4955_v10, %s3739_s12  ;;  %3385 = vmatprep.mubr.msk.f32.mxu1 %vm1031_vm3, %v1004_v14  ;;  %v5596_v14 = vld [vmem:[#allocation20_spill] sm:$0xff] }
 0x26f   :  { %3386 = vmatmul.mubr.msk.f32.gmra.mrb[62].mxu1 %vm1031_vm3, %v1005_v31  ;;  %v4989_v31 = vadd.f32 %v4917_v36, %v4814_v26  ;;  %v5005_v26 = vadd.f32 %v4917_v36, %v4670_v52  ;;  %v5599_v52 = vld [vmem:[#allocation14_spill] sm:$0xff] }
 0x271   :  { %2491 = vrot.lane.b32.xlu1 %v4972_v8, %s3739_s12 }
 0x272   :  { %v931_v60 = vpop.permute.xlu1 %930  ;;  %2489 = vrot.lane.b32.xlu0 %v4977_v12, %s3739_s12 }
 0x273   :  { %v929_v47 = vpop.permute.xlu0 %928  ;;  %v1007_v28 = vadd.f32 %v931_v60, %v5597_v43 }
 0x274   :  { %v1006_v51 = vadd.f32 %v929_v47, %v5596_v14  ;;  %v5598_v47 = vld [vmem:[#allocation13_spill] sm:$0xff] }
 0x275   :  { %2527 = vrot.lane.b32.xlu1 %v4985_v53, %s3739_s12 }
 0x276   :  { %2525 = vrot.lane.b32.xlu0 %v4989_v31, %s3739_s12  ;;  %3388 = vmatprep.mubr.msk.f32.mxu1 %vm1031_vm3, %v1006_v51 }
 0x277   :  { %3389 = vmatmul.mubr.msk.f32.gmra.mrb[64].mxu1 %vm1031_vm3, %v1007_v28  ;;  %v5041_v28 = vadd.f32 %v4842_v7, %v4917_v36  ;;  %v5056_v7 = vadd.f32 %v4697_v21, %v4917_v36  ;;  %v1819_v21 = vld [vmem:[%s5520_s3 + $0x28] sm:$0xff] }
 0x279   :  { %2495 = vrot.lane.b32.xlu1 %v5000_v55, %s3739_s12  ;;  %5600 = vst [vmem:[#allocation18_spill] sm:$0xff] %v5041_v28 }
 0x27a   :  { %v935_v34 = vpop.permute.xlu1 %934  ;;  %2493 = vrot.lane.b32.xlu0 %v5005_v26, %s3739_s12 }
 0x27b   :  { %v933_v60 = vpop.permute.xlu0 %932  ;;  %v1009_v51 = vadd.f32 %v935_v34, %v5599_v52 }
 0x27c   :  { %v1008_v14 = vadd.f32 %v933_v60, %v5598_v47  ;;  %v5602_v60 = vld [vmem:[#allocation15_spill] sm:$0xff] }
 0x27d   :  { %2531 = vrot.lane.b32.xlu1 %v5013_v4, %s3739_s12 }
 0x27e   :  { %2529 = vrot.lane.b32.xlu0 %v5017_v61, %s3739_s12  ;;  %3391 = vmatprep.mubr.msk.f32.mxu1 %vm1031_vm3, %v1008_v14 }
 0x27f   :  { %3392 = vmatmul.mubr.msk.f32.gmra.mrb[66].mxu1 %vm1031_vm3, %v1009_v51 }
 0x281   :  { %2499 = vrot.lane.b32.xlu1 %v5028_v9, %s3739_s12 }
 0x282   :  { %v939_v43 = vpop.permute.xlu1 %938  ;;  %2497 = vrot.lane.b32.xlu0 %v5033_v25, %s3739_s12 }
 0x283   :  { %v937_v34 = vpop.permute.xlu0 %936  ;;  %v1011_v14 = vadd.f32 %v939_v43, %v5603_v44  ;;  %v5604_v43 = vld [vmem:[#allocation8_spill] sm:$0xff] }
 0x284   :  { %v1010_v47 = vadd.f32 %v937_v34, %v5602_v60  ;;  %v5605_v60 = vld [vmem:[#allocation6_spill] sm:$0xff] }
 0x285   :  { %2535 = vrot.lane.b32.xlu1 %v5041_v28, %s3739_s12  ;;  %v5607_v28 = vld [vmem:[#allocation7_spill] sm:$0xff] }
 0x286   :  { %2533 = vrot.lane.b32.xlu0 %v5045_v49, %s3739_s12  ;;  %3394 = vmatprep.mubr.msk.f32.mxu1 %vm1031_vm3, %v1010_v47  ;;  %v5077_v47 = vadd.f32 %v4860_v38, %v4917_v36 }
 0x287   :  { %v943_v52 = vpop.permute.xlu1 %942  ;;  %3395 = vmatmul.mubr.msk.f32.gmra.mrb[68].mxu1 %vm1031_vm3, %v1011_v14 }
 0x288   :  { %v941_v51 = vpop.permute.xlu0 %940  ;;  %v1013_v44 = vadd.f32 %v943_v52, %v5605_v60  ;;  %v5082_v52 = vadd.f32 %v4917_v36, %v4870_v11  ;;  %v5606_v60 = vld [vmem:[#allocation10_spill] sm:$0xff] }
 0x289   :  { %v1012_v34 = vadd.f32 %v941_v51, %v5604_v43  ;;  %2503 = vrot.lane.b32.xlu1 %v5056_v7, %s3739_s12  ;;  %v3637_v51 = vpack.c.bf16 %v1820_v39, %v1819_v21 }
 0x28a   :  { %2501 = vrot.lane.b32.xlu0 %v5061_v19, %s3739_s12 }
 0x28b   :  { %v947_v14 = vpop.permute.xlu1 %946  ;;  %3397 = vmatprep.mubr.msk.f32.mxu1 %vm1031_vm3, %v1012_v34  ;;  %3638 = vmatprep.subr.bf16.mxu1 %v3637_v51  ;;  %v5093_v34 = vadd.f32 %v4715_v56, %v4917_v36  ;;  %v5109_v56 = vadd.f32 %v4878_v20, %v4917_v36  ;;  %v5125_v20 = vadd.f32 %v4733_v2, %v4917_v36 }
 0x28c   :  { %v945_v43 = vpop.permute.xlu0 %944  ;;  %3398 = vmatmul.mubr.msk.f32.gmra.mrb[70].mxu1 %vm1031_vm3, %v1013_v44  ;;  %v1015_v38 = vadd.f32 %v947_v14, %v5607_v28  ;;  %v5098_v44 = vadd.f32 %v4917_v36, %v4724_v24  ;;  %v5114_v24 = vadd.f32 %v4917_v36, %v4886_v3  ;;  %v5130_v3 = vadd.f32 %v4917_v36, %v4742_v0 }
 0x28d   :  { %v1014_v49 = vadd.f32 %v945_v43, %v5606_v60  ;;  %2539 = vrot.lane.b32.xlu1 %v5077_v47, %s3739_s12  ;;  %3640 = vmatpush3.bf16.msra.mxu1 %v3637_v51  ;;  %v5151_v2 = vadd.f32 %v4752_v23, %v4917_v36  ;;  %v5155_v0 = vadd.f32 %v4917_v36, %v4761_v62 }
 0x28e   :  { %2537 = vrot.lane.b32.xlu0 %v5082_v52, %s3739_s12 }
 0x28f   :  { %v951_v11 = vpop.permute.xlu1 %950  ;;  %3400 = vmatprep.mubr.msk.f32.mxu1 %vm1031_vm3, %v1014_v49 }
 0x290   :  { %v949_v21 = vpop.permute.xlu0 %948  ;;  %3401 = vmatmul.mubr.msk.f32.gmra.mrb[72].mxu1 %vm1031_vm3, %v1015_v38  ;;  %v1017_v39 = vadd.f32 %v951_v11, %v4610_v27 }
 0x291   :  { %v1016_v28 = vadd.f32 %v949_v21, %v4615_v63  ;;  %2507 = vrot.lane.b32.xlu1 %v5093_v34, %s3739_s12 }
 0x292   :  { %2505 = vrot.lane.b32.xlu0 %v5098_v44, %s3739_s12 }
 0x293   :  { %v955_v49 = vpop.permute.xlu1 %954  ;;  %3403 = vmatprep.mubr.msk.f32.mxu1 %vm1031_vm3, %v1016_v28 }
 0x294   :  { %v953_v63 = vpop.permute.xlu0 %952  ;;  %3404 = vmatmul.mubr.msk.f32.gmra.mrb[74].mxu1 %vm1031_vm3, %v1017_v39  ;;  %v1019_v27 = vadd.f32 %v955_v49, %v4627_v58  ;;  %v5139_v58 = vadd.f32 %v4896_v29, %v4917_v36  ;;  %v5164_v29 = vld [vmem:[%s5521_s4 + $0x5] ss:$0 sm:$0xff] }
 0x295   :  { %v1018_v14 = vadd.f32 %v953_v63, %v4632_v1  ;;  %2543 = vrot.lane.b32.xlu1 %v5109_v56, %s3739_s12  ;;  %v5143_v1 = vadd.f32 %v4917_v36, %v4906_v13 }
 0x296   :  { %2541 = vrot.lane.b32.xlu0 %v5114_v24, %s3739_s12 }
 0x297   :  { %3406 = vmatprep.mubr.msk.f32.mxu1 %vm1031_vm3, %v1018_v14  ;;  %v1692_v21 = vpop.permute.xlu1 %1691 }
 0x298   :  { %3407 = vmatmul.mubr.msk.f32.gmra.mrb[76].mxu1 %vm1031_vm3, %v1019_v27  ;;  %v1690_v11 = vpop.permute.xlu0 %1689 }
 0x299   :  { %2511 = vrot.lane.b32.xlu1 %v5125_v20, %s3739_s12 }
 0x29a   :  { %2509 = vrot.lane.b32.xlu0 %v5130_v3, %s3739_s12 }
 0x29d   :  { %2547 = vrot.lane.b32.xlu1 %v5139_v58, %s3739_s12 }
 0x29e   :  { %2545 = vrot.lane.b32.xlu0 %v5143_v1, %s3739_s12 }
 0x2a1   :  { %2515 = vrot.lane.b32.xlu1 %v5151_v2, %s3739_s12 }
 0x2a2   :  { %2513 = vrot.lane.b32.xlu0 %v5155_v0, %s3739_s12 }
 0x305   :  { %v3363_v13 = vpop.f32.mrb[46].mxu1 }
 0x306   :  { %v1200_v51 = vadd.f32 %v3363_v13, %v5164_v29  ;;  %v1194_v23 = vpop.f32.mrb[47].mxu1 }
 0x307   :  { %v1195_v43 = vadd.f32 %v5164_v29, %v1194_v23  ;;  %v5608_v23 = vld [vmem:[#allocation9_spill] sm:$0xff] }
 0x308   :  { %v1354_v60 = vmax.f32 %v1200_v51, 0.0 }
 0x309   :  { %v1353_v62 = vmax.f32 %v1195_v43, 0.0 }
 0x30a   :  { %v1626_v36 = vmul.f32 %v4636_v46, %v1354_v60  ;;  %v1694_v60 = vpop.permute.xlu0 %1693 }
 0x30b   :  { %v1625_v38 = vmul.f32 %v4642_v6, %v1353_v62 }
 0x30c   :  { %v1786_v49 = vadd.f32 %v1692_v21, %v1626_v36 }
 0x30d   :  { %v1785_v28 = vadd.f32 %v1690_v11, %v1625_v38  ;;  %v3366_v39 = vpop.f32.mrb[48].mxu1  ;;  %v1696_v38 = vpop.permute.xlu1 %1695 }
 0x30e   :  { %v1210_v63 = vadd.f32 %v3366_v39, %v5164_v29  ;;  %v1204_v14 = vpop.f32.mrb[49].mxu1 }
 0x30f   :  { %v1205_v27 = vadd.f32 %v5164_v29, %v1204_v14  ;;  %3481 = vmatprep.mubr.msk.f32.mxu1 %vm1031_vm3, %v1785_v28 }
 0x310   :  { %v1356_v13 = vmax.f32 %v1210_v63, 0.0  ;;  %3482 = vmatmul.mubr.msk.f32.vlgmr.msra.gmra.mrb[78].mxu1 %vm1031_vm3, %v1786_v49  ;;  %v5609_v49 = vld [vmem:[#allocation12_spill] sm:$0xff] }
 0x311   :  { %v1355_v51 = vmax.f32 %v1205_v27, 0.0  ;;  %v1698_v27 = vpop.permute.xlu0 %1697 }
 0x312   :  { %v1628_v46 = vmul.f32 %v4652_v48, %v1356_v13 }
 0x313   :  { %v1627_v6 = vmul.f32 %v5608_v23, %v1355_v51  ;;  %v3369_v43 = vpop.f32.mrb[50].mxu1  ;;  %v1700_v51 = vpop.permute.xlu1 %1699 }
 0x314   :  { %v1220_v62 = vadd.f32 %v3369_v43, %v5164_v29  ;;  %v1214_v36 = vpop.f32.mrb[51].mxu1  ;;  %v1788_v39 = vadd.f32 %v1696_v38, %v1628_v46  ;;  %v5610_v38 = vld [vmem:[#allocation11_spill] sm:$0xff] }
 0x315   :  { %v1787_v11 = vadd.f32 %v1694_v60, %v1627_v6  ;;  %v1215_v21 = vadd.f32 %v5164_v29, %v1214_v36 }
 0x316   :  { %v1358_v14 = vmax.f32 %v1220_v62, 0.0 }
 0x317   :  { %v1357_v28 = vmax.f32 %v1215_v21, 0.0  ;;  %3484 = vmatprep.mubr.msk.f32.mxu1 %vm1031_vm3, %v1787_v11  ;;  %v1702_v21 = vpop.permute.xlu0 %1701 }
 0x318   :  { %v1630_v63 = vmul.f32 %v5609_v49, %v1358_v14  ;;  %3485 = vmatmul.mubr.msk.f32.gmra.mrb[80].mxu1 %vm1031_vm3, %v1788_v39  ;;  %v1704_v39 = vpop.permute.xlu1 %1703 }
 0x319   :  { %v1629_v48 = vmul.f32 %v4674_v54, %v1357_v28 }
 0x31a   :  { %v3372_v13 = vpop.f32.mrb[52].mxu1  ;;  %v1790_v60 = vadd.f32 %v1700_v51, %v1630_v63 }
 0x31b   :  { %v1789_v23 = vadd.f32 %v1698_v27, %v1629_v48  ;;  %v1230_v43 = vadd.f32 %v3372_v13, %v5164_v29  ;;  %v1224_v6 = vpop.f32.mrb[53].mxu1 }
 0x31c   :  { %v1225_v46 = vadd.f32 %v5164_v29, %v1224_v6  ;;  %v5612_v6 = vld [vmem:[#allocation22_spill] sm:$0xff] }
 0x31d   :  { %v1360_v62 = vmax.f32 %v1230_v43, 0.0  ;;  %3487 = vmatprep.mubr.msk.f32.mxu1 %vm1031_vm3, %v1789_v23  ;;  %v5611_v23 = vld [vmem:[#allocation21_spill] sm:$0xff] }
 0x31e   :  { %v1359_v36 = vmax.f32 %v1225_v46, 0.0  ;;  %3488 = vmatmul.mubr.msk.f32.gmra.mrb[82].mxu1 %vm1031_vm3, %v1790_v60  ;;  %v1706_v60 = vpop.permute.xlu0 %1705  ;;  %v1708_v46 = vpop.permute.xlu1 %1707 }
 0x31f   :  { %v1632_v11 = vmul.f32 %v5610_v38, %v1360_v62 }
 0x320   :  { %v1631_v54 = vmul.f32 %v4692_v5, %v1359_v36 }
 0x321   :  { %v1792_v49 = vadd.f32 %v1704_v39, %v1632_v11 }
 0x322   :  { %v1791_v14 = vadd.f32 %v1702_v21, %v1631_v54  ;;  %v3375_v28 = vpop.f32.mrb[54].mxu1 }
 0x323   :  { %v1240_v48 = vadd.f32 %v3375_v28, %v5164_v29  ;;  %v1234_v63 = vpop.f32.mrb[55].mxu1  ;;  %v5613_v28 = vld [vmem:[#allocation23_spill] sm:$0xff] }
 0x324   :  { %v1235_v27 = vadd.f32 %v5164_v29, %v1234_v63  ;;  %3490 = vmatprep.mubr.msk.f32.mxu1 %vm1031_vm3, %v1791_v14  ;;  %v1710_v63 = vpop.permute.xlu0 %1709 }
 0x325   :  { %v1362_v13 = vmax.f32 %v1240_v48, 0.0  ;;  %3491 = vmatmul.mubr.msk.f32.gmra.mrb[84].mxu1 %vm1031_vm3, %v1792_v49 }
 0x326   :  { %v1361_v51 = vmax.f32 %v1235_v27, 0.0  ;;  %v1712_v27 = vpop.permute.xlu1 %1711 }
 0x327   :  { %v1634_v43 = vmul.f32 %v5611_v23, %v1362_v13 }
 0x328   :  { %v1633_v5 = vmul.f32 %v5612_v6, %v1361_v51 }
 0x329   :  { %v1794_v38 = vadd.f32 %v1708_v46, %v1634_v43 }
 0x32a   :  { %v1793_v62 = vadd.f32 %v1706_v60, %v1633_v5  ;;  %v3378_v36 = vpop.f32.mrb[56].mxu1 }
 0x32b   :  { %v1250_v11 = vadd.f32 %v3378_v36, %v5164_v29  ;;  %v1244_v54 = vpop.f32.mrb[57].mxu1  ;;  %v5614_v36 = vld [vmem:[#allocation24_spill] sm:$0xff] }
 0x32c   :  { %v1245_v21 = vadd.f32 %v5164_v29, %v1244_v54  ;;  %3493 = vmatprep.mubr.msk.f32.mxu1 %vm1031_vm3, %v1793_v62 }
 0x32d   :  { %v1364_v39 = vmax.f32 %v1250_v11, 0.0  ;;  %3494 = vmatmul.mubr.msk.f32.gmra.mrb[86].mxu1 %vm1031_vm3, %v1794_v38  ;;  %v1714_v38 = vpop.permute.xlu0 %1713  ;;  %v1716_v11 = vpop.permute.xlu1 %1715 }
 0x32e   :  { %v1363_v14 = vmax.f32 %v1245_v21, 0.0 }
 0x32f   :  { %v1636_v49 = vmul.f32 %v5613_v28, %v1364_v39 }
 0x330   :  { %v1635_v48 = vmul.f32 %v4728_v30, %v1363_v14 }
 0x331   :  { %v1796_v23 = vadd.f32 %v1712_v27, %v1636_v49  ;;  %v5615_v27 = vld [vmem:[#allocation25_spill] sm:$0xff] }
 0x332   :  { %v1795_v13 = vadd.f32 %v1710_v63, %v1635_v48  ;;  %v3381_v51 = vpop.f32.mrb[58].mxu1 }
 0x333   :  { %v1260_v43 = vadd.f32 %v3381_v51, %v5164_v29  ;;  %v1254_v6 = vpop.f32.mrb[59].mxu1  ;;  %v1718_v51 = vpop.permute.xlu0 %1717 }
 0x334   :  { %v1255_v5 = vadd.f32 %v5164_v29, %v1254_v6  ;;  %3496 = vmatprep.mubr.msk.f32.mxu1 %vm1031_vm3, %v1795_v13 }
 0x335   :  { %v1366_v60 = vmax.f32 %v1260_v43, 0.0  ;;  %3497 = vmatmul.mubr.msk.f32.gmra.mrb[88].mxu1 %vm1031_vm3, %v1796_v23  ;;  %v1720_v23 = vpop.permute.xlu1 %1719 }
 0x336   :  { %v1365_v46 = vmax.f32 %v1255_v5, 0.0 }
 0x337   :  { %v1638_v62 = vmul.f32 %v4740_v33, %v1366_v60 }
 0x338   :  { %v1637_v30 = vmul.f32 %v5614_v36, %v1365_v46 }
 0x339   :  { %v1798_v39 = vadd.f32 %v1716_v11, %v1638_v62  ;;  %v1722_v11 = vpop.permute.xlu0 %1721 }
 0x33a   :  { %v1797_v54 = vadd.f32 %v1714_v38, %v1637_v30  ;;  %v3384_v21 = vpop.f32.mrb[60].mxu1 }
 0x33b   :  { %v1270_v14 = vadd.f32 %v3384_v21, %v5164_v29  ;;  %v1264_v28 = vpop.f32.mrb[61].mxu1  ;;  %v1724_v21 = vpop.permute.xlu1 %1723 }
 0x33c   :  { %v1265_v49 = vadd.f32 %v5164_v29, %v1264_v28  ;;  %3499 = vmatprep.mubr.msk.f32.mxu1 %vm1031_vm3, %v1797_v54 }
 0x33d   :  { %v1368_v48 = vmax.f32 %v1270_v14, 0.0  ;;  %3500 = vmatmul.mubr.msk.f32.gmra.mrb[90].mxu1 %vm1031_vm3, %v1798_v39 }
 0x33e   :  { %v1367_v63 = vmax.f32 %v1265_v49, 0.0 }
 0x33f   :  { %v1640_v33 = vmul.f32 %v5615_v27, %v1368_v48 }
 0x340   :  { %v1639_v13 = vmul.f32 %v4765_v22, %v1367_v63  ;;  %v5616_v22 = vld [vmem:[#allocation26_spill] sm:$0xff] }
 0x341   :  { %v1800_v5 = vadd.f32 %v1720_v23, %v1640_v33  ;;  %v1726_v33 = vpop.permute.xlu0 %1725 }
 0x342   :  { %v1799_v43 = vadd.f32 %v1718_v51, %v1639_v13  ;;  %v3387_v6 = vpop.f32.mrb[62].mxu1  ;;  %v5617_v51 = vld [vmem:[#allocation27_spill] sm:$0xff] }
 0x343   :  { %v1280_v60 = vadd.f32 %v3387_v6, %v5164_v29  ;;  %v1274_v46 = vpop.f32.mrb[63].mxu1 }
 0x344   :  { %v1275_v62 = vadd.f32 %v5164_v29, %v1274_v46  ;;  %3502 = vmatprep.mubr.msk.f32.mxu1 %vm1031_vm3, %v1799_v43 }
 0x345   :  { %v1370_v36 = vmax.f32 %v1280_v60, 0.0  ;;  %3503 = vmatmul.mubr.msk.f32.gmra.mrb[92].mxu1 %vm1031_vm3, %v1800_v5 }
 0x346   :  { %v1369_v30 = vmax.f32 %v1275_v62, 0.0 }
 0x347   :  { %v1642_v38 = vmul.f32 %v4776_v45, %v1370_v36  ;;  %v1728_v45 = vpop.permute.xlu1 %1727  ;;  %v1730_v36 = vpop.permute.xlu0 %1729 }
 0x348   :  { %v1641_v54 = vmul.f32 %v5616_v22, %v1369_v30 }
 0x349   :  { %v1802_v28 = vadd.f32 %v1724_v21, %v1642_v38  ;;  %v5618_v21 = vld [vmem:[#allocation28_spill] sm:$0xff] }
 0x34a   :  { %v1801_v39 = vadd.f32 %v1722_v11, %v1641_v54  ;;  %v3390_v14 = vpop.f32.mrb[64].mxu1 }
 0x34b   :  { %v1290_v49 = vadd.f32 %v3390_v14, %v5164_v29  ;;  %v1284_v48 = vpop.f32.mrb[65].mxu1  ;;  %v1732_v38 = vpop.permute.xlu1 %1731 }
 0x34c   :  { %v1285_v63 = vadd.f32 %v5164_v29, %v1284_v48  ;;  %3505 = vmatprep.mubr.msk.f32.mxu1 %vm1031_vm3, %v1801_v39  ;;  %v1734_v39 = vpop.permute.xlu0 %1733 }
 0x34d   :  { %v1372_v27 = vmax.f32 %v1290_v49, 0.0  ;;  %3506 = vmatmul.mubr.msk.f32.gmra.mrb[94].mxu1 %vm1031_vm3, %v1802_v28 }
 0x34e   :  { %v1371_v13 = vmax.f32 %v1285_v63, 0.0 }
 0x34f   :  { %v1644_v23 = vmul.f32 %v5617_v51, %v1372_v27  ;;  %v1736_v49 = vpop.permute.xlu1 %1735  ;;  %v5619_v51 = vld [vmem:[#allocation29_spill] sm:$0xff] }
 0x350   :  { %v1643_v43 = vmul.f32 %v4802_v41, %v1371_v13 }
 0x351   :  { %v1804_v60 = vadd.f32 %v1728_v45, %v1644_v23 }
 0x352   :  { %v1803_v6 = vadd.f32 %v1726_v33, %v1643_v43  ;;  %v3393_v5 = vpop.f32.mrb[66].mxu1  ;;  %v1738_v43 = vpop.permute.xlu0 %1737 }
 0x353   :  { %v1300_v46 = vadd.f32 %v3393_v5, %v5164_v29  ;;  %v1294_v62 = vpop.f32.mrb[67].mxu1 }
 0x354   :  { %v1295_v30 = vadd.f32 %v5164_v29, %v1294_v62  ;;  %3508 = vmatprep.mubr.msk.f32.mxu1 %vm1031_vm3, %v1803_v6 }
 0x355   :  { %v1374_v11 = vmax.f32 %v1300_v46, 0.0  ;;  %3509 = vmatmul.mubr.msk.f32.gmra.mrb[96].mxu1 %vm1031_vm3, %v1804_v60  ;;  %v1740_v46 = vpop.permute.xlu1 %1739 }
 0x356   :  { %v1373_v22 = vmax.f32 %v1295_v30, 0.0 }
 0x357   :  { %v1646_v54 = vmul.f32 %v4812_v35, %v1374_v11 }
 0x358   :  { %v1645_v41 = vmul.f32 %v5618_v21, %v1373_v22 }
 0x359   :  { %v1806_v48 = vadd.f32 %v1732_v38, %v1646_v54 }
 0x35a   :  { %v1805_v14 = vadd.f32 %v1730_v36, %v1645_v41  ;;  %v3396_v28 = vpop.f32.mrb[68].mxu1 }
 0x35b   :  { %v1310_v63 = vadd.f32 %v3396_v28, %v5164_v29  ;;  %v1304_v27 = vpop.f32.mrb[69].mxu1 }
 0x35c   :  { %v1305_v33 = vadd.f32 %v5164_v29, %v1304_v27  ;;  %3511 = vmatprep.mubr.msk.f32.mxu1 %vm1031_vm3, %v1805_v14  ;;  %v5620_v14 = vld [vmem:[#allocation30_spill] sm:$0xff] }
 0x35d   :  { %v1376_v13 = vmax.f32 %v1310_v63, 0.0  ;;  %3512 = vmatmul.mubr.msk.f32.gmra.mrb[98].mxu1 %vm1031_vm3, %v1806_v48  ;;  %v1742_v48 = vpop.permute.xlu0 %1741 }
 0x35e   :  { %v1375_v45 = vmax.f32 %v1305_v33, 0.0 }
 0x35f   :  { %v1648_v35 = vmul.f32 %v5619_v51, %v1376_v13  ;;  %v3399_v23 = vpop.f32.mrb[70].mxu1 }
 0x360   :  { %v1647_v6 = vmul.f32 %v4838_v40, %v1375_v45  ;;  %v1320_v5 = vadd.f32 %v3399_v23, %v5164_v29  ;;  %v1314_v60 = vpop.f32.mrb[71].mxu1  ;;  %v5621_v45 = vld [vmem:[#allocation31_spill] sm:$0xff] }
 0x361   :  { %v1315_v62 = vadd.f32 %v5164_v29, %v1314_v60  ;;  %v1808_v38 = vadd.f32 %v1736_v49, %v1648_v35 }
 0x362   :  { %v1807_v36 = vadd.f32 %v1734_v39, %v1647_v6  ;;  %v1378_v30 = vmax.f32 %v1320_v5, 0.0  ;;  %v1744_v39 = vpop.permute.xlu1 %1743 }
 0x363   :  { %v1377_v11 = vmax.f32 %v1315_v62, 0.0  ;;  %v3402_v22 = vpop.f32.mrb[72].mxu1 }
 0x364   :  { %v1650_v54 = vmul.f32 %v4848_v50, %v1378_v30  ;;  %v1330_v21 = vadd.f32 %v3402_v22, %v5164_v29  ;;  %v1324_v41 = vpop.f32.mrb[73].mxu1  ;;  %3514 = vmatprep.mubr.msk.f32.mxu1 %vm1031_vm3, %v1807_v36  ;;  %v1746_v36 = vpop.permute.xlu0 %1745 }
 0x365   :  { %v1649_v40 = vmul.f32 %v5620_v14, %v1377_v11  ;;  %v1325_v28 = vadd.f32 %v5164_v29, %v1324_v41  ;;  %3515 = vmatmul.mubr.msk.f32.gmra.mrb[100].mxu1 %vm1031_vm3, %v1808_v38 }
 0x366   :  { %v1380_v63 = vmax.f32 %v1330_v21, 0.0  ;;  %v1810_v13 = vadd.f32 %v1740_v46, %v1650_v54  ;;  %v1748_v22 = vpop.permute.xlu1 %1747 }
 0x367   :  { %v1809_v27 = vadd.f32 %v1738_v43, %v1649_v40  ;;  %v1379_v49 = vmax.f32 %v1325_v28, 0.0  ;;  %v3405_v33 = vpop.f32.mrb[74].mxu1 }
 0x368   :  { %v1652_v50 = vmul.f32 %v5621_v45, %v1380_v63  ;;  %v1340_v51 = vadd.f32 %v3405_v33, %v5164_v29  ;;  %v1334_v35 = vpop.f32.mrb[75].mxu1 }
 0x369   :  { %v1651_v23 = vmul.f32 %v4874_v17, %v1379_v49  ;;  %v1335_v6 = vadd.f32 %v5164_v29, %v1334_v35  ;;  %3517 = vmatprep.mubr.msk.f32.mxu1 %vm1031_vm3, %v1809_v27  ;;  %v5277_v35 = vld [vmem:[%s5521_s4 + $0x6] ss:$0 sm:$0xff] }
 0x36a   :  { %v1382_v5 = vmax.f32 %v1340_v51, 0.0  ;;  %3518 = vmatmul.mubr.msk.f32.gmra.mrb[102].mxu1 %vm1031_vm3, %v1810_v13  ;;  %v1812_v30 = vadd.f32 %v1744_v39, %v1652_v50 }
 0x36b   :  { %v1811_v60 = vadd.f32 %v1742_v48, %v1651_v23  ;;  %v1381_v62 = vmax.f32 %v1335_v6, 0.0  ;;  %v3408_v43 = vpop.f32.mrb[76].mxu1  ;;  %v1750_v48 = vpop.permute.xlu0 %1749 }
 0x36c   :  { %v1654_v46 = vmul.f32 %v4884_v42, %v1382_v5  ;;  %v1350_v38 = vadd.f32 %v3408_v43, %v5164_v29  ;;  %v1344_v11 = vpop.f32.mrb[77].mxu1 }
 0x36d   :  { %v1653_v17 = vmul.f32 %v4890_v57, %v1381_v62  ;;  %v1345_v54 = vadd.f32 %v5164_v29, %v1344_v11  ;;  %3520 = vmatprep.mubr.msk.f32.mxu1 %vm1031_vm3, %v1811_v60  ;;  %v1752_v57 = vpop.permute.xlu1 %1751 }
 0x36e   :  { %v1384_v21 = vmax.f32 %v1350_v38, 0.0  ;;  %3521 = vmatmul.mubr.msk.f32.gmra.mrb[104].mxu1 %vm1031_vm3, %v1812_v30  ;;  %v1814_v40 = vadd.f32 %v1748_v22, %v1654_v46 }
 0x36f   :  { %v1813_v41 = vadd.f32 %v1746_v36, %v1653_v17  ;;  %v1383_v14 = vmax.f32 %v1345_v54, 0.0  ;;  %v5264_v27 = vpop.permute.xlu0 %2517  ;;  %v5284_v36 = vld [vmem:[%s5521_s4 + $0x7] sm:$0x1] }
 0x370   :  { %v1656_v28 = vmul.f32 %v4903_v18, %v1384_v21 }
 0x371   :  { %v1655_v42 = vmul.f32 %v4910_v32, %v1383_v14  ;;  %3523 = vmatprep.mubr.msk.f32.mxu1 %vm1031_vm3, %v1813_v41  ;;  %v5262_v39 = vpop.permute.xlu1 %2519 }
 0x372   :  { %3524 = vmatmul.mubr.msk.f32.gmra.mrb[106].mxu1 %vm1031_vm3, %v1814_v40  ;;  %v1816_v29 = vadd.f32 %v1752_v57, %v1656_v28  ;;  %v2614_v28 = vld [vmem:[%s5521_s4 + $0x8] sm:$0x1]  ;;  %s3742_s4 = smov [#allocation2]  }
 0x373   :  { %v1815_v63 = vadd.f32 %v1750_v48, %v1655_v42  ;;  %v2486_v18 = vpop.permute.xlu0 %2485  ;;  %v3740_v48 = vmov 0   ;;  %s2823_s29 = sshll.u32 %s3742_s4, 4  ;;  %s2824_s29 = int_to_ptr.vmem [resolvable:$true] %s2823_s29 }
 0x374   :  { %3712 = vset.pattern.permute.xlu0 %v3740_v48  ;;  %s3714_s30 = scalar_lea.vmem %s2824_s29, 32  ;;  %p3719_p1 = scmp.lt.s32.totalorder %s2824_s29, %s2824_s29 }
 0x375   :  { %3526 = vmatprep.mubr.msk.f32.mxu1 %vm1031_vm3, %v1815_v63  ;;  %v2488_v49 = vpop.permute.xlu1 %2487  ;;  %2617 = vperm.xlu0 %3712, %v2614_v28   ;;  %p3715_p0 = scmp.ne.s32.totalorder %s2824_s29, %s3714_s30  ;;  %p3720_p2 = scmp.lt.s32.totalorder %s3714_s30, %s3714_s30 }
 0x376   :  { %3527 = vmatmul.mubr.msk.f32.gmra.mrb[108].mxu1 %vm1031_vm3, %v1816_v29 }
 0x377   :  { %v5268_v32 = vpop.permute.xlu0 %2521  ;;  %3287 = vmatprep.mubr.msk.f32.mxu1 %vm1031_vm3, %v5284_v36  ;;  %p3721_p3 = por %p3720_p2, %p3719_p1 }
 0x379   :  { %v5266_v33 = vpop.permute.xlu1 %2523  ;;  %p3722_p4 = pnand %p3721_p3, %p3715_p0 }
 0x37b   :  { %v2490_v45 = vpop.permute.xlu0 %2489 }
 0x37d   :  { %v2492_v13 = vpop.permute.xlu1 %2491 }
 0x37f   :  { %v5272_v51 = vpop.permute.xlu0 %2525 }
 0x381   :  { %v5270_v50 = vpop.permute.xlu1 %2527 }
 0x383   :  { %v2494_v6 = vpop.permute.xlu0 %2493 }
 0x385   :  { %v2496_v23 = vpop.permute.xlu1 %2495 }
 0x387   :  { %v5291_v22 = vpop.permute.xlu0 %2529 }
 0x389   :  { %v5288_v38 = vpop.permute.xlu1 %2531 }
 0x38b   :  { %v2498_v63 = vpop.permute.xlu0 %2497 }
 0x3e3   :  { %v3483_v5 = vpop.f32.mrb[78].mxu1 }
 0x3e4   :  { %v1996_v60 = vadd.f32 %v3483_v5, %v5277_v35  ;;  %v1990_v62 = vpop.f32.mrb[79].mxu1 }
 0x3e5   :  { %v1991_v43 = vadd.f32 %v5277_v35, %v1990_v62 }
 0x3e6   :  { %v2150_v30 = vmax.f32 %v1996_v60, 0.0 }
 0x3e7   :  { %v2149_v46 = vmax.f32 %v1991_v43, 0.0 }
 0x3e8   :  { %v2422_v11 = vmul.f32 %v4938_v37, %v2150_v30 }
 0x3e9   :  { %v2421_v17 = vmul.f32 %v4943_v16, %v2149_v46  ;;  %v2500_v16 = vpop.permute.xlu1 %2499 }
 0x3ea   :  { %v5294_v54 = vadd.f32 %v2488_v49, %v2422_v11 }
 0x3eb   :  { %v5296_v21 = vadd.f32 %v2486_v18, %v2421_v17  ;;  %v3486_v41 = vpop.f32.mrb[80].mxu1 }
 0x3ec   :  { %v2006_v14 = vadd.f32 %v3486_v41, %v5277_v35  ;;  %v2000_v40 = vpop.f32.mrb[81].mxu1  ;;  %v5315_v41 = vpop.permute.xlu0 %2533 }
 0x3ed   :  { %v3660_v42 = vpack.c.bf16 %v5294_v54, %v5296_v21  ;;  %v2001_v37 = vadd.f32 %v5277_v35, %v2000_v40  ;;  %v5313_v11 = vpop.permute.xlu1 %2535 }
 0x3ee   :  { %v2152_v57 = vmax.f32 %v2006_v14, 0.0 }
 0x3ef   :  { %v2151_v29 = vmax.f32 %v2001_v37, 0.0 }
 0x3f0   :  { %v2424_v49 = vmul.f32 %v4972_v8, %v2152_v57 }
 0x3f1   :  { %v2423_v18 = vmul.f32 %v4977_v12, %v2151_v29  ;;  %v3489_v5 = vpop.f32.mrb[82].mxu1  ;;  %v2504_v57 = vpop.permute.xlu1 %2503 }
 0x3f2   :  { %v5307_v60 = vadd.f32 %v2492_v13, %v2424_v49  ;;  %v2016_v62 = vadd.f32 %v3489_v5, %v5277_v35  ;;  %v2010_v43 = vpop.f32.mrb[83].mxu1  ;;  %v2502_v49 = vpop.permute.xlu0 %2501 }
 0x3f3   :  { %v5310_v30 = vadd.f32 %v2490_v45, %v2423_v18  ;;  %v2011_v46 = vadd.f32 %v5277_v35, %v2010_v43 }
 0x3f4   :  { %v2154_v17 = vmax.f32 %v2016_v62, 0.0 }
 0x3f5   :  { %v3666_v8 = vpack.c.bf16 %v5307_v60, %v5310_v30  ;;  %v2153_v14 = vmax.f32 %v2011_v46, 0.0 }
 0x3f6   :  { %v2426_v12 = vmul.f32 %v5000_v55, %v2154_v17  ;;  %v5337_v17 = vpop.permute.xlu0 %2537 }
 0x3f7   :  { %v2425_v13 = vmul.f32 %v5005_v26, %v2153_v14 }
 0x3f8   :  { %v5321_v40 = vadd.f32 %v2496_v23, %v2426_v12  ;;  %v3492_v28 = vpop.f32.mrb[84].mxu1 }
 0x3f9   :  { %v5323_v45 = vadd.f32 %v2494_v6, %v2425_v13  ;;  %v2026_v37 = vadd.f32 %v3492_v28, %v5277_v35  ;;  %v2020_v48 = vpop.f32.mrb[85].mxu1  ;;  %v5333_v6 = vpop.permute.xlu1 %2539 }
 0x3fa   :  { %v2021_v29 = vadd.f32 %v5277_v35, %v2020_v48 }
 0x3fb   :  { %v2156_v5 = vmax.f32 %v2026_v37, 0.0 }
 0x3fc   :  { %v2155_v62 = vmax.f32 %v2021_v29, 0.0 }
 0x3fd   :  { %v2428_v55 = vmul.f32 %v5028_v9, %v2156_v5 }
 0x3fe   :  { %v2427_v26 = vmul.f32 %v5033_v25, %v2155_v62 }
 0x3ff   :  { %v5331_v23 = vadd.f32 %v2500_v16, %v2428_v55  ;;  %v2508_v16 = vpop.permute.xlu1 %2507 }
 0x400   :  { %v5335_v43 = vadd.f32 %v2498_v63, %v2427_v26  ;;  %v3495_v46 = vpop.f32.mrb[86].mxu1  ;;  %v2506_v63 = vpop.permute.xlu0 %2505 }
 0x401   :  { %v2036_v14 = vadd.f32 %v3495_v46, %v5277_v35  ;;  %v2030_v12 = vpop.f32.mrb[87].mxu1 }
 0x402   :  { %v2031_v28 = vadd.f32 %v5277_v35, %v2030_v12 }
 0x403   :  { %v2158_v9 = vmax.f32 %v2036_v14, 0.0 }
 0x404   :  { %v2157_v37 = vmax.f32 %v2031_v28, 0.0  ;;  %v5353_v28 = vpop.permute.xlu1 %2543 }
 0x405   :  { %v2430_v25 = vmul.f32 %v5056_v7, %v2158_v9  ;;  %v5355_v9 = vpop.permute.xlu0 %2541 }
 0x406   :  { %v2429_v48 = vmul.f32 %v5061_v19, %v2157_v37 }
 0x407   :  { %v5345_v29 = vadd.f32 %v2504_v57, %v2430_v25 }
 0x408   :  { %v5347_v5 = vadd.f32 %v2502_v49, %v2429_v48  ;;  %v3498_v62 = vpop.f32.mrb[88].mxu1  ;;  %v2512_v46 = vpop.permute.xlu1 %2511 }
 0x409   :  { %v2046_v55 = vadd.f32 %v3498_v62, %v5277_v35  ;;  %v2040_v26 = vpop.f32.mrb[89].mxu1 }
 0x40a   :  { %v2041_v14 = vadd.f32 %v5277_v35, %v2040_v26 }
 0x40b   :  { %v2160_v12 = vmax.f32 %v2046_v55, 0.0 }
 0x40c   :  { %v2159_v7 = vmax.f32 %v2041_v14, 0.0  ;;  %v2510_v14 = vpop.permute.xlu0 %2509 }
 0x40d   :  { %v2432_v19 = vmul.f32 %v5093_v34, %v2160_v12 }
 0x40e   :  { %v2431_v57 = vmul.f32 %v5098_v44, %v2159_v7 }
 0x40f   :  { %v5359_v49 = vadd.f32 %v2508_v16, %v2432_v19 }
 0x410   :  { %v5361_v37 = vadd.f32 %v2506_v63, %v2431_v57  ;;  %v3501_v25 = vpop.f32.mrb[90].mxu1  ;;  %v5371_v63 = vpop.permute.xlu1 %2547 }
 0x411   :  { %v2056_v48 = vadd.f32 %v3501_v25, %v5277_v35  ;;  %v2050_v62 = vpop.f32.mrb[91].mxu1  ;;  %v5375_v19 = vpop.permute.xlu0 %2545 }
 0x412   :  { %v2051_v26 = vadd.f32 %v5277_v35, %v2050_v62 }
 0x413   :  { %v2162_v13 = vmax.f32 %v2056_v48, 0.0 }
 0x414   :  { %v2161_v18 = vmax.f32 %v2051_v26, 0.0 }
 0x415   :  { %v2434_v34 = vmul.f32 %v5125_v20, %v2162_v13  ;;  %v2514_v26 = vpop.permute.xlu0 %2513 }
 0x416   :  { %v2433_v44 = vmul.f32 %v5130_v3, %v2161_v18  ;;  %v2516_v18 = vpop.permute.xlu1 %2515 }
 0x417   :  { %v5369_v16 = vadd.f32 %v2512_v46, %v2434_v34 }
 0x418   :  { %v5373_v12 = vadd.f32 %v2510_v14, %v2433_v44  ;;  %v3504_v7 = vpop.f32.mrb[92].mxu1 }
 0x419   :  { %v2066_v57 = vadd.f32 %v3504_v7, %v5277_v35  ;;  %v2060_v25 = vpop.f32.mrb[93].mxu1 }
 0x41a   :  { %v2061_v62 = vadd.f32 %v5277_v35, %v2060_v25 }
 0x41b   :  { %v2164_v20 = vmax.f32 %v2066_v57, 0.0 }
 0x41c   :  { %v2163_v13 = vmax.f32 %v2061_v62, 0.0 }
 0x41d   :  { %v2436_v3 = vmul.f32 %v5151_v2, %v2164_v20  ;;  %v5622_v20 = vld [vmem:[#allocation32_spill] sm:$0xff] }
 0x41e   :  { %v2435_v46 = vmul.f32 %v5155_v0, %v2163_v13 }
 0x41f   :  { %v5383_v14 = vadd.f32 %v2516_v18, %v2436_v3 }
 0x420   :  { %v5385_v34 = vadd.f32 %v2514_v26, %v2435_v46  ;;  %v3507_v44 = vpop.f32.mrb[94].mxu1 }
 0x421   :  { %v2076_v7 = vadd.f32 %v3507_v44, %v5277_v35  ;;  %v2070_v55 = vpop.f32.mrb[95].mxu1 }
 0x422   :  { %v3702_v48 = vpack.c.bf16 %v5383_v14, %v5385_v34  ;;  %v2071_v57 = vadd.f32 %v5277_v35, %v2070_v55  ;;  %v5634_v34 = vlaneseq }
 0x423   :  { %v2166_v25 = vmax.f32 %v2076_v7, 0.0 }
 0x424   :  { %v2165_v62 = vmax.f32 %v2071_v57, 0.0  ;;  %vm2814_vm5 = vcmp.lt.s32.totalorder %v5634_v34, 256 }
 0x425   :  { %v2438_v2 = vmul.f32 %v4923_v15, %v2166_v25 }
 0x426   :  { %v2437_v0 = vmul.f32 %v5622_v20, %v2165_v62 }
 0x427   :  { %v2598_v13 = vadd.f32 %v5262_v39, %v2438_v2 }
 0x428   :  { %v2597_v3 = vadd.f32 %v5264_v27, %v2437_v0  ;;  %v3510_v18 = vpop.f32.mrb[96].mxu1 }
 0x429   :  { %v2086_v46 = vadd.f32 %v3510_v18, %v5277_v35  ;;  %v2080_v26 = vpop.f32.mrb[97].mxu1 }
 0x42a   :  { %v3657_v55 = vpack.c.bf16 %v2598_v13, %v2597_v3  ;;  %v2081_v7 = vadd.f32 %v5277_v35, %v2080_v26 }
 0x42b   :  { %v2168_v15 = vmax.f32 %v2086_v46, 0.0 }
 0x42c   :  { %v2167_v57 = vmax.f32 %v2081_v7, 0.0  ;;  %3659 = vmatprep.subr.msk.bf16.mxu1 %vm5398_vm4, %v3657_v55 }
 0x42d   :  { %v2440_v39 = vmul.f32 %v4951_v59, %v2168_v15  ;;  %3662 = vmatpush3.bf16.xpose.msk.msra.mxu1 %vm5398_vm4, %v3660_v42 }
 0x42e   :  { %v2439_v27 = vmul.f32 %v4955_v10, %v2167_v57 }
 0x42f   :  { %v2600_v25 = vadd.f32 %v5266_v33, %v2440_v39 }
 0x430   :  { %v2599_v62 = vadd.f32 %v5268_v32, %v2439_v27  ;;  %v3513_v2 = vpop.f32.mrb[98].mxu1 }
 0x431   :  { %v2096_v20 = vadd.f32 %v3513_v2, %v5277_v35  ;;  %v2090_v0 = vpop.f32.mrb[99].mxu1  ;;  %v5626_v2 = vld [vmem:[#allocation18_spill] sm:$0xff] }
 0x432   :  { %v3663_v13 = vpack.c.bf16 %v2600_v25, %v2599_v62  ;;  %v2091_v3 = vadd.f32 %v5277_v35, %v2090_v0  ;;  %v5627_v0 = vld [vmem:[#allocation17_spill] sm:$0xff] }
 0x433   :  { %v2170_v59 = vmax.f32 %v2096_v20, 0.0 }
 0x434   :  { %v2169_v18 = vmax.f32 %v2091_v3, 0.0  ;;  %3665 = vmatprep.subr.msk.bf16.mxu1 %vm5398_vm4, %v3663_v13 }
 0x435   :  { %v2442_v54 = vmul.f32 %v4985_v53, %v2170_v59  ;;  %3668 = vmatpush3.bf16.xpose.msk.msra.mxu1 %vm5398_vm4, %v3666_v8 }
 0x436   :  { %v2441_v10 = vmul.f32 %v4989_v31, %v2169_v18  ;;  %v5625_v31 = vpack.c.bf16 %v5321_v40, %v5323_v45 }
 0x437   :  { %v2602_v33 = vadd.f32 %v5270_v50, %v2442_v54  ;;  %v5628_v54 = vpack.c.bf16 %v5331_v23, %v5335_v43 }
 0x438   :  { %v2601_v32 = vadd.f32 %v5272_v51, %v2441_v10  ;;  %v3516_v21 = vpop.f32.mrb[100].mxu1 }
 0x439   :  { %v2106_v42 = vadd.f32 %v3516_v21, %v5277_v35  ;;  %v2100_v46 = vpop.f32.mrb[101].mxu1 }
 0x43a   :  { %v3669_v26 = vpack.c.bf16 %v2602_v33, %v2601_v32  ;;  %v2101_v55 = vadd.f32 %v5277_v35, %v2100_v46 }
 0x43b   :  { %v2172_v53 = vmax.f32 %v2106_v42, 0.0 }
 0x43c   :  { %v2171_v7 = vmax.f32 %v2101_v55, 0.0  ;;  %3671 = vmatprep.subr.msk.bf16.mxu1 %vm5398_vm4, %v3669_v26 }
 0x43d   :  { %v2444_v60 = vmul.f32 %v5013_v4, %v2172_v53  ;;  %v3519_v30 = vpop.f32.mrb[102].mxu1  ;;  %3674 = vmatpush3.bf16.xpose.msk.msra.mxu1 %vm5398_vm4, %v5625_v31 }
 0x43e   :  { %v2443_v50 = vmul.f32 %v5017_v61, %v2171_v7  ;;  %v2116_v51 = vadd.f32 %v3519_v30, %v5277_v35  ;;  %v2110_v8 = vpop.f32.mrb[103].mxu1 }
 0x43f   :  { %v2604_v15 = vadd.f32 %v5288_v38, %v2444_v60  ;;  %v2111_v57 = vadd.f32 %v5277_v35, %v2110_v8  ;;  %v5630_v8 = vpack.c.bf16 %v5359_v49, %v5361_v37  ;;  %v5632_v49 = vld [vmem:[#allocation5_spill] sm:$0xff] }
 0x440   :  { %v2603_v39 = vadd.f32 %v5291_v22, %v2443_v50  ;;  %v2174_v27 = vmax.f32 %v2116_v51, 0.0  ;;  %v5629_v50 = vpack.c.bf16 %v5345_v29, %v5347_v5  ;;  %v3741_v29 = vmov 1966171168  }
 0x441   :  { %v2173_v4 = vmax.f32 %v2111_v57, 0.0  ;;  %v3522_v25 = vpop.f32.mrb[104].mxu1  ;;  %v2798_v5 = vunpack.c.l.s4 %v3741_v29  ;;  %v5633_v37 = vsub.s32 0, %v5632_v49 }
 0x442   :  { %v3675_v62 = vpack.c.bf16 %v2604_v15, %v2603_v39  ;;  %v2446_v40 = vmul.f32 %v5626_v2, %v2174_v27  ;;  %v2126_v45 = vadd.f32 %v3522_v25, %v5277_v35  ;;  %v2120_v20 = vpop.f32.mrb[105].mxu1 }
 0x443   :  { %v2445_v61 = vmul.f32 %v5627_v0, %v2173_v4  ;;  %v2121_v13 = vadd.f32 %v5277_v35, %v2120_v20 }
 0x444   :  { %v2606_v3 = vadd.f32 %v5313_v11, %v2446_v40  ;;  %v2176_v38 = vmax.f32 %v2126_v45, 0.0  ;;  %3677 = vmatprep.subr.msk.bf16.mxu1 %vm5398_vm4, %v3675_v62 }
 0x445   :  { %v2605_v22 = vadd.f32 %v5315_v41, %v2445_v61  ;;  %v2175_v59 = vmax.f32 %v2121_v13, 0.0  ;;  %v3525_v18 = vpop.f32.mrb[106].mxu1  ;;  %3680 = vmatpush3.bf16.xpose.msk.msra.mxu1 %vm5398_vm4, %v5628_v54 }
 0x446   :  { %v2448_v10 = vmul.f32 %v5077_v47, %v2176_v38  ;;  %v2136_v33 = vadd.f32 %v3525_v18, %v5277_v35  ;;  %v2130_v32 = vpop.f32.mrb[107].mxu1 }
 0x447   :  { %v3681_v11 = vpack.c.bf16 %v2606_v3, %v2605_v22  ;;  %v2447_v21 = vmul.f32 %v5082_v52, %v2175_v59  ;;  %v2131_v42 = vadd.f32 %v5277_v35, %v2130_v32 }
 0x448   :  { %v2608_v41 = vadd.f32 %v5333_v6, %v2448_v10  ;;  %v2178_v46 = vmax.f32 %v2136_v33, 0.0 }
 0x449   :  { %v2607_v26 = vadd.f32 %v5337_v17, %v2447_v21  ;;  %v2177_v55 = vmax.f32 %v2131_v42, 0.0  ;;  %v3528_v23 = vpop.f32.mrb[108].mxu1  ;;  %3683 = vmatprep.subr.msk.bf16.mxu1 %vm5398_vm4, %v3681_v11 }
 0x44a   :  { %v2450_v47 = vmul.f32 %v5109_v56, %v2178_v46  ;;  %v2146_v43 = vadd.f32 %v3528_v23, %v5277_v35  ;;  %v2140_v53 = vpop.f32.mrb[109].mxu1 }
 0x44b   :  { %v3687_v7 = vpack.c.bf16 %v2608_v41, %v2607_v26  ;;  %v2449_v52 = vmul.f32 %v5114_v24, %v2177_v55  ;;  %v2141_v60 = vadd.f32 %v5277_v35, %v2140_v53 }
 0x44c   :  { %v2610_v6 = vadd.f32 %v5353_v28, %v2450_v47  ;;  %v2180_v30 = vmax.f32 %v2146_v43, 0.0 }
 0x44d   :  { %v2609_v17 = vadd.f32 %v5355_v9, %v2449_v52  ;;  %v2179_v31 = vmax.f32 %v2141_v60, 0.0  ;;  %3686 = vmatpush3.bf16.xpose.msk.msra.mxu1 %vm5398_vm4, %v5629_v50 }
 0x44e   :  { %v2452_v56 = vmul.f32 %v5139_v58, %v2180_v30  ;;  %3689 = vmatprep.subr.msk.bf16.mxu1 %vm5398_vm4, %v3687_v7  ;;  %v5631_v58 = vpack.c.bf16 %v5369_v16, %v5373_v12 }
 0x44f   :  { %v3693_v24 = vpack.c.bf16 %v2610_v6, %v2609_v17  ;;  %v2451_v35 = vmul.f32 %v5143_v1, %v2179_v31  ;;  %v2618_v1 = vpop.permute.xlu0 %2617 }
 0x450   :  { %v2612_v28 = vadd.f32 %v5371_v63, %v2452_v56  ;;  %v2623_v16 = vrot.slane %v2618_v1, %v5633_v37  ;;  %v2799_v63 = vunpack.c.0.s8 %v2798_v5 }
 0x451   :  { %v2611_v51 = vadd.f32 %v5375_v19, %v2451_v35 }
 0x452   :  { %v2802_v39 = vsub.s32 %v2799_v63, %v5632_v49 }
 0x453   :  { %v3699_v9 = vpack.c.bf16 %v2612_v28, %v2611_v51 }
 0x455   :  { %3692 = vmatpush3.bf16.xpose.msk.msra.mxu1 %vm5398_vm4, %v5630_v8 }
 0x456   :  { %3695 = vmatprep.subr.msk.bf16.mxu1 %vm5398_vm4, %v3693_v24 }
 0x45d   :  { %3698 = vmatpush3.bf16.xpose.msk.msra.mxu1 %vm5398_vm4, %v5631_v58 }
 0x45e   :  { %3701 = vmatprep.subr.msk.bf16.mxu1 %vm5398_vm4, %v3699_v9 }
 0x465   :  { %3704 = vmatpush3.bf16.xpose.msk.msra.mxu1 %vm5398_vm4, %v3702_v48 }
 0x46c   :  { %3288 = vmatmul.mubr.msk.f32.vlgmr.msra.gmra.mrb[110].mxu1 %vm1031_vm3, %v5284_v36 }
 0x53f   :  { %v2789_v12 = vpop.f32.mrb[110].mxu1 }
 0x540   :  { %v2790_v19 = vadd.f32 %v2789_v12, %v2623_v16  ;;  %v2791_v15 = vpop.f32.mrb[111].mxu1 }
 0x541   :  { %v2792_v57 = vadd.f32 %v2791_v15, %v2623_v16 }
 0x543   :  { %v2796_v14 = vcombine.low %v2790_v19, %v2792_v57 }
 0x545   :  { %v2803_v48 = vrot.slane %v2796_v14, %v2802_v39 }
 0x547   :  { %v2810_v36 = vrot.slane %v2803_v48, %v2802_v39 }
 0x549   :  { %2816 = vst.msk [vmem:[#allocation2] sm:$0x3] %vm2814_vm5, %v2810_v36 }
 0x54a   :  { %3725 = shalt.err (!%p3722_p4)
}
 0x54b   :  { %s3726_s8 = scalar_lea.hbm %s5522_s5, 32 }
 0x54c   :  { %p3727_p5 = scmp.ne.s32.totalorder %s5522_s5, %s3726_s8  ;;  %p3730_p6 = scmp.lt.u32.totalorder %s3726_s8, %s5522_s5 }
 0x54e   :  { %p3732_p7 = pnand %p3730_p6, %p3727_p5 }
 0x550   :  { %3735 = shalt.err (!%p3732_p7)
}
 0x551   :  { %2826 = dma.vmem_to_hbm [thread:$0]  %s2824_s29, 32, %s5522_s5, [#allocation3]  }
 0x552   :  { %3736 = dma.done.wait [#allocation3], 32  }
 0x553   :  { %3737 = vsyncadd [#allocation3], 4294967264 }
 0x554   :  { %2830 = vsyncpa [#allocation3], 1 }

</bundles_post_ra>
